<compile_context>
chip_gen: v7x
topology: tpu7x:2x2x1
jax: 0.10.0
libtpu: 0.0.40
codegen_flags: <defaults>
</compile_context>

<pallas_src>
import jax
import jax.numpy as jnp
from jax.experimental import pallas as pl
from jax.experimental.pallas import tpu as pltpu


def _bottleneck_kernel(x_ref,
                       w1_ref, t1_ref,
                       w2_ref, t2_ref,
                       w3_ref, t3_ref,
                       o_ref,
                       pad_ref):
    Nb, H, W, C = x_ref.shape
    M = Nb * H * W

    # ---- conv1 (1x1), bias+BN folded into w1/t1, ReLU ----------------------
    h1 = jnp.dot(x_ref[...].reshape(M, C).astype(jnp.bfloat16), w1_ref[...],
                 preferred_element_type=jnp.float32) + t1_ref[...]
    h1 = jnp.maximum(h1, 0.0)

    # ---- spatial zero-pad by 1 into VMEM scratch ---------------------------
    # Only the 1-pixel halo is zeroed; the interior is fully overwritten each
    # step (megacore-safe: no reliance on a program_id==0 init).
    pad_ref[:, 0:1, :, :] = jnp.zeros((Nb, 1, W + 2, C), pad_ref.dtype)
    pad_ref[:, H + 1:H + 2, :, :] = jnp.zeros((Nb, 1, W + 2, C), pad_ref.dtype)
    pad_ref[:, :, 0:1, :] = jnp.zeros((Nb, H + 2, 1, C), pad_ref.dtype)
    pad_ref[:, :, W + 1:W + 2, :] = jnp.zeros((Nb, H + 2, 1, C), pad_ref.dtype)
    pad_ref[:, 1:H + 1, 1:W + 1, :] = h1.reshape(Nb, H, W, C)

    # ---- conv2 (3x3, dilation=1): 9 accumulated MXU dots -------------------
    # Each shifted window is consumed directly by a (M,C)x(C,C) matmul and
    # accumulated in f32 — no lane-axis concatenate, no (M, 9C) patch buffer.
    # w2_ref holds the 9 (C,C) tap slabs, tap index k = 3*i + j, matching the
    # host-side (3,3,Cin,Cout) -> (9,Cin,Cout) reshape.
    acc = None
    for k in range(9):
        i, j = divmod(k, 3)
        tap = pad_ref[:, i:i + H, j:j + W, :].reshape(M, C).astype(jnp.bfloat16)
        d = jnp.dot(tap, w2_ref[k], preferred_element_type=jnp.float32)
        acc = d if acc is None else acc + d
    h2 = jnp.maximum(acc + t2_ref[...], 0.0).astype(jnp.bfloat16)

    # ---- conv3 (1x1), ReLU --------------------------------------------------
    h3 = jnp.dot(h2, w3_ref[...], preferred_element_type=jnp.float32) + t3_ref[...]
    h3 = jnp.maximum(h3, 0.0)

    # ---- residual add + ReLU (re-read x_ref: the tile is VMEM-resident, so
    # we don't keep a second f32 flat copy live across the three matmuls) -----
    out = jnp.maximum(h3 + x_ref[...].reshape(M, C), 0.0)
    o_ref[...] = out.reshape(Nb, H, W, C).astype(o_ref.dtype)


def dilated_bottleneck(x_nchw, params, *, dilate_rate=1, eps=1e-5, block_n=None):
    if dilate_rate != 1:
        raise ValueError(
            "residual add needs dilate_rate==1 with the module's padding=1 "
            "(the PyTorch module itself shape-errors otherwise)")

    x = jnp.transpose(x_nchw, (0, 2, 3, 1)).astype(jnp.float32)   # NCHW -> NHWC
    N, H, W, C = x.shape

    # ---- lane-dense channel padding (128-lane vregs / unmasked stores) ------
    C_pad = ((C + 127) // 128) * 128
    cpad = C_pad - C
    if cpad:
        x = jnp.pad(x, ((0, 0), (0, 0), (0, 0), (0, cpad)))

    # ---- fold conv bias + eval-mode BatchNorm into weights / shifts ----------
    def fold(w, b, bn):
        gamma, beta, mean, var = bn
        scale = gamma / jnp.sqrt(var + eps)                  # per out-channel
        shift = (b - mean) * scale + beta
        return (w * scale).astype(jnp.bfloat16), shift.astype(jnp.float32)

    w1 = jnp.transpose(params["conv1_w"][:, :, 0, 0])        # (Cin, Cout)
    w1, t1 = fold(w1, params["conv1_b"], params["bn1"])
    w2 = jnp.transpose(params["conv2_w"], (2, 3, 1, 0))      # (3,3,Cin,Cout)
    w2, t2 = fold(w2, params["conv2_b"], params["bn2"])
    w2 = w2.reshape(9, C, C)                                 # 9 tap slabs, k=3*i+j
    w3 = jnp.transpose(params["conv3_w"][:, :, 0, 0])
    w3, t3 = fold(w3, params["conv3_b"], params["bn3"])

    if cpad:
        w1 = jnp.pad(w1, ((0, cpad), (0, cpad)))
        w2 = jnp.pad(w2, ((0, 0), (0, cpad), (0, cpad)))
        w3 = jnp.pad(w3, ((0, cpad), (0, cpad)))
        t1 = jnp.pad(t1, ((0, cpad),))
        t2 = jnp.pad(t2, ((0, cpad),))
        t3 = jnp.pad(t3, ((0, cpad),))
    t1 = t1.reshape(1, C_pad)
    t2 = t2.reshape(1, C_pad)
    t3 = t3.reshape(1, C_pad)

    # ---- generation-gated VMEM budget + real footprint model ----------------
    try:
        vmem_cap = int(pltpu.get_tpu_info().vmem_capacity_bytes)
    except Exception:
        vmem_cap = 64 * 1024 * 1024            # conservative (v7x-sized) fallback
    budget = (vmem_cap * 3) // 4               # ~48 MiB on v7x, ~96 MiB on v5e/v6e

    def footprint(nb):
        m = nb * H * W
        io = 2 * 2 * m * C_pad * 4             # in + out tiles, double-buffered
        pad_b = nb * (H + 2) * (W + 2) * C_pad * 4
        wts = 2 * (11 * C_pad * C_pad * 2 + 3 * C_pad * 4)   # assume 2x buffered
        act = 5 * m * C_pad * 4                # h1 / acc / h2 / h3 / out live vals
        return io + pad_b + wts + act

    if block_n is None:
        max_bn = max(1, N // 2)   # keep >=2 grid steps so v7x's 2 TCs both work
        block_n = 1
        for nb in range(1, max_bn + 1):
            if N % nb == 0 and footprint(nb) <= budget:
                block_n = nb
    assert N % block_n == 0, "block_n must divide the batch size"

    def fullspec(shape):
        nd = len(shape)
        return pl.BlockSpec(shape, lambda n, _nd=nd: (0,) * _nd)

    flops = 2 * N * H * W * 11 * C_pad * C_pad            # 2x 1x1 + 9x 1x1-taps
    bytes_accessed = (2 * N * H * W * C_pad * 4
                      + 11 * C_pad * C_pad * 2 + 3 * C_pad * 4)
    cost = pl.CostEstimate(flops=int(flops), transcendentals=0,
                           bytes_accessed=int(bytes_accessed))

    out = pl.pallas_call(
        _bottleneck_kernel,
        out_shape=jax.ShapeDtypeStruct((N, H, W, C_pad), jnp.float32),
        grid_spec=pltpu.PrefetchScalarGridSpec(
            num_scalar_prefetch=0,
            grid=(N // block_n,),
            in_specs=[
                pl.BlockSpec((block_n, H, W, C_pad), lambda n: (n, 0, 0, 0)),
                fullspec((C_pad, C_pad)), fullspec((1, C_pad)),
                fullspec((9, C_pad, C_pad)), fullspec((1, C_pad)),
                fullspec((C_pad, C_pad)), fullspec((1, C_pad)),
            ],
            out_specs=pl.BlockSpec((block_n, H, W, C_pad), lambda n: (n, 0, 0, 0)),
            scratch_shapes=[
                pltpu.VMEM((block_n, H + 2, W + 2, C_pad), jnp.float32)],
        ),
        compiler_params=pltpu.CompilerParams(
            # batch steps are independent -> shard across v7x's 2 TensorCores
            dimension_semantics=("parallel",),
            vmem_limit_bytes=int(budget)),
        cost_estimate=cost,
    )(x, w1, t1, w2, t2, w3, t3)

    out = jnp.transpose(out, (0, 3, 1, 2))                  # NHWC -> NCHW
    if cpad:
        out = out[:, :C]
    return out


def init_params(key, C):
    ks = jax.random.split(key, 6)

    def conv_w(k, shape):
        fan_in = shape[1] * shape[2] * shape[3]
        return jax.random.normal(k, shape, jnp.float32) / jnp.sqrt(fan_in)

    def bn(k):
        k1, k2 = jax.random.split(k)
        gamma = 1.0 + 0.05 * jnp.arange(C, dtype=jnp.float32)
        beta = 0.02 * jnp.arange(C, dtype=jnp.float32)
        mean = 0.1 * jax.random.normal(k1, (C,), jnp.float32)
        var = 0.8 + 0.4 * jax.random.uniform(k2, (C,), jnp.float32)
        return (gamma, beta, mean, var)

    return {
        "conv1_w": conv_w(ks[0], (C, C, 1, 1)),
        "conv1_b": 0.01 * jnp.arange(C, dtype=jnp.float32),
        "bn1": bn(ks[1]),
        "conv2_w": conv_w(ks[2], (C, C, 3, 3)),
        "conv2_b": -0.01 * jnp.arange(C, dtype=jnp.float32),
        "bn2": bn(ks[3]),
        "conv3_w": conv_w(ks[4], (C, C, 1, 1)),
        "conv3_b": 0.005 * jnp.arange(C, dtype=jnp.float32),
        "bn3": bn(ks[5]),
    }


def _reference(x_nchw, params, dilate_rate=1, eps=1e-5):
    """Pure-JAX (XLA conv, full f32) reference in NHWC, eval-mode BN."""
    x = jnp.transpose(x_nchw, (0, 2, 3, 1)).astype(jnp.float32)
    dn = ("NHWC", "HWIO", "NHWC")
    prec = jax.lax.Precision.HIGHEST

    def bn(h, p):
        gamma, beta, mean, var = p
        return (h - mean) / jnp.sqrt(var + eps) * gamma + beta

    h = jax.lax.conv_general_dilated(
        x, jnp.transpose(params["conv1_w"], (2, 3, 1, 0)), (1, 1),
        [(0, 0), (0, 0)], dimension_numbers=dn, precision=prec) + params["conv1_b"]
    h = jax.nn.relu(bn(h, params["bn1"]))
    h = jax.lax.conv_general_dilated(
        h, jnp.transpose(params["conv2_w"], (2, 3, 1, 0)), (1, 1),
        [(1, 1), (1, 1)], rhs_dilation=(dilate_rate, dilate_rate),
        dimension_numbers=dn, precision=prec) + params["conv2_b"]
    h = jax.nn.relu(bn(h, params["bn2"]))
    h = jax.lax.conv_general_dilated(
        h, jnp.transpose(params["conv3_w"], (2, 3, 1, 0)), (1, 1),
        [(0, 0), (0, 0)], dimension_numbers=dn, precision=prec) + params["conv3_b"]
    h = jax.nn.relu(bn(h, params["bn3"]))
    y = jax.nn.relu(h + x)
    return jnp.transpose(y, (0, 3, 1, 2))


if __name__ == "__main__":
    key = jax.random.PRNGKey(0)
    k_x, k_p = jax.random.split(key)

    N, C, H, W = 2, 8, 16, 16
    x = jax.random.normal(k_x, (N, C, H, W), jnp.float32)     # NCHW, as in PyTorch
    params = init_params(k_p, C)

    y = jax.block_until_ready(dilated_bottleneck(x, params, dilate_rate=1))
    y_ref = jax.block_until_ready(_reference(x, params, dilate_rate=1))

    assert y.shape == (N, C, H, W)
    # Kernel uses bf16 MXU operands (f32 accumulation) vs. the full-f32
    # reference: expected worst-element differences ~1e-3..1e-2, so compare
    # at 2e-2 (real bugs show up as O(1) errors).
    max_err = float(jnp.max(jnp.abs(y - y_ref)))
    assert jnp.allclose(y, y_ref, atol=2e-2, rtol=2e-2), max_err

    print("KERNEL_OK")
</pallas_src>

<mosaic_0001>
module attributes {stable_mosaic.version = 11 : i64} {
  func.func @_bottleneck_kernel(%arg0: i32, %arg1: memref<1x16x16x128xf32, #tpu.memory_space<vmem>>, %arg2: memref<128x128xbf16, #tpu.memory_space<vmem>>, %arg3: memref<1x128xf32, #tpu.memory_space<vmem>>, %arg4: memref<9x128x128xbf16, #tpu.memory_space<vmem>>, %arg5: memref<1x128xf32, #tpu.memory_space<vmem>>, %arg6: memref<128x128xbf16, #tpu.memory_space<vmem>>, %arg7: memref<1x128xf32, #tpu.memory_space<vmem>>, %arg8: memref<1x16x16x128xf32, #tpu.memory_space<vmem>>, %arg9: memref<1x18x18x128xf32, #tpu.memory_space<vmem>>) attributes {dimension_semantics = [#tpu.dimension_semantics<parallel>], iteration_bounds = array<i64: 2>, scalar_prefetch = 0 : i64, scratch_operands = 1 : i64, tpu.core_type = #tpu.core_type<tc>, window_params = [{transform_indices = @transform_0, window_bounds = array<i64: 1, 16, 16, 128>}, {pipeline_mode = #tpu.pipeline_mode<synchronous>, transform_indices = @transform_1, window_bounds = array<i64: 128, 128>}, {pipeline_mode = #tpu.pipeline_mode<synchronous>, transform_indices = @transform_2, window_bounds = array<i64: 1, 128>}, {pipeline_mode = #tpu.pipeline_mode<synchronous>, transform_indices = @transform_3, window_bounds = array<i64: 9, 128, 128>}, {pipeline_mode = #tpu.pipeline_mode<synchronous>, transform_indices = @transform_4, window_bounds = array<i64: 1, 128>}, {pipeline_mode = #tpu.pipeline_mode<synchronous>, transform_indices = @transform_5, window_bounds = array<i64: 128, 128>}, {pipeline_mode = #tpu.pipeline_mode<synchronous>, transform_indices = @transform_6, window_bounds = array<i64: 1, 128>}, {transform_indices = @transform_7, window_bounds = array<i64: 1, 16, 16, 128>}]} {
    %c0 = arith.constant 0 : index
    %c0_0 = arith.constant 0 : index
    %c0_1 = arith.constant 0 : index
    %c0_2 = arith.constant 0 : index
    %0 = vector.load %arg1[%c0, %c0_0, %c0_1, %c0_2] : memref<1x16x16x128xf32, #tpu.memory_space<vmem>>, vector<1x16x16x128xf32>
    %1 = vector.shape_cast %0 : vector<1x16x16x128xf32> to vector<256x128xf32>
    %2 = arith.truncf %1 : vector<256x128xf32> to vector<256x128xbf16>
    %c0_3 = arith.constant 0 : index
    %c0_4 = arith.constant 0 : index
    %3 = vector.load %arg2[%c0_3, %c0_4] : memref<128x128xbf16, #tpu.memory_space<vmem>>, vector<128x128xbf16>
    %cst = arith.constant dense<0.000000e+00> : vector<256x128xf32>
    %4 = tpu.matmul %2, %3, %cst {dimension_numbers = #tpu.dot_dimension_numbers<[1], [0], [0], [1], [0, 0, 1, 1], [], []>} : vector<256x128xbf16>, vector<128x128xbf16>, vector<256x128xf32> -> vector<256x128xf32>
    %c0_5 = arith.constant 0 : index
    %c0_6 = arith.constant 0 : index
    %5 = vector.load %arg3[%c0_5, %c0_6] : memref<1x128xf32, #tpu.memory_space<vmem>>, vector<1x128xf32>
    %6 = vector.broadcast %5 : vector<1x128xf32> to vector<256x128xf32>
    %7 = arith.addf %4, %6 : vector<256x128xf32>
    %cst_7 = arith.constant 0.000000e+00 : f32
    %8 = vector.broadcast %cst_7 : f32 to vector<256x128xf32>
    %9 = arith.maximumf %7, %8 : vector<256x128xf32>
    %cst_8 = arith.constant 0.000000e+00 : f32
    %10 = vector.broadcast %cst_8 : f32 to vector<1x1x18x128xf32>
    %c0_9 = arith.constant 0 : index
    %c0_10 = arith.constant 0 : index
    %c0_11 = arith.constant 0 : index
    %c0_12 = arith.constant 0 : index
    %11 = vector.load %arg9[%c0_9, %c0_10, %c0_11, %c0_12] : memref<1x18x18x128xf32, #tpu.memory_space<vmem>>, vector<1x1x18x128xf32>
    tpu.vector_store %arg9[%c0_9, %c0_10, %c0_11, %c0_12], %10 {strides = array<i32>} : memref<1x18x18x128xf32, #tpu.memory_space<vmem>>, vector<1x1x18x128xf32>,
    %cst_13 = arith.constant 0.000000e+00 : f32
    %12 = vector.broadcast %cst_13 : f32 to vector<1x1x18x128xf32>
    %c0_14 = arith.constant 0 : index
    %c17 = arith.constant 17 : index
    %c0_15 = arith.constant 0 : index
    %c0_16 = arith.constant 0 : index
    %13 = vector.load %arg9[%c0_14, %c17, %c0_15, %c0_16] : memref<1x18x18x128xf32, #tpu.memory_space<vmem>>, vector<1x1x18x128xf32>
    tpu.vector_store %arg9[%c0_14, %c17, %c0_15, %c0_16], %12 {strides = array<i32>} : memref<1x18x18x128xf32, #tpu.memory_space<vmem>>, vector<1x1x18x128xf32>,
    %cst_17 = arith.constant 0.000000e+00 : f32
    %14 = vector.broadcast %cst_17 : f32 to vector<1x18x1x128xf32>
    %c0_18 = arith.constant 0 : index
    %c0_19 = arith.constant 0 : index
    %c0_20 = arith.constant 0 : index
    %c0_21 = arith.constant 0 : index
    %15 = vector.load %arg9[%c0_18, %c0_19, %c0_20, %c0_21] : memref<1x18x18x128xf32, #tpu.memory_space<vmem>>, vector<1x18x1x128xf32>
    tpu.vector_store %arg9[%c0_18, %c0_19, %c0_20, %c0_21], %14 {strides = array<i32>} : memref<1x18x18x128xf32, #tpu.memory_space<vmem>>, vector<1x18x1x128xf32>,
    %cst_22 = arith.constant 0.000000e+00 : f32
    %16 = vector.broadcast %cst_22 : f32 to vector<1x18x1x128xf32>
    %c0_23 = arith.constant 0 : index
    %c0_24 = arith.constant 0 : index
    %c17_25 = arith.constant 17 : index
    %c0_26 = arith.constant 0 : index
    %17 = vector.load %arg9[%c0_23, %c0_24, %c17_25, %c0_26] : memref<1x18x18x128xf32, #tpu.memory_space<vmem>>, vector<1x18x1x128xf32>
    tpu.vector_store %arg9[%c0_23, %c0_24, %c17_25, %c0_26], %16 {strides = array<i32>} : memref<1x18x18x128xf32, #tpu.memory_space<vmem>>, vector<1x18x1x128xf32>,
    %18 = vector.shape_cast %9 : vector<256x128xf32> to vector<1x16x16x128xf32>
    %c0_27 = arith.constant 0 : index
    %c1 = arith.constant 1 : index
    %c1_28 = arith.constant 1 : index
    %c0_29 = arith.constant 0 : index
    %19 = vector.load %arg9[%c0_27, %c1, %c1_28, %c0_29] : memref<1x18x18x128xf32, #tpu.memory_space<vmem>>, vector<1x16x16x128xf32>
    tpu.vector_store %arg9[%c0_27, %c1, %c1_28, %c0_29], %18 {strides = array<i32>} : memref<1x18x18x128xf32, #tpu.memory_space<vmem>>, vector<1x16x16x128xf32>,
    %c0_30 = arith.constant 0 : index
    %c0_31 = arith.constant 0 : index
    %c0_32 = arith.constant 0 : index
    %c0_33 = arith.constant 0 : index
    %20 = vector.load %arg9[%c0_30, %c0_31, %c0_32, %c0_33] : memref<1x18x18x128xf32, #tpu.memory_space<vmem>>, vector<1x16x16x128xf32>
    %21 = vector.shape_cast %20 : vector<1x16x16x128xf32> to vector<256x128xf32>
    %22 = arith.truncf %21 : vector<256x128xf32> to vector<256x128xbf16>
    %c0_34 = arith.constant 0 : index
    %c0_35 = arith.constant 0 : index
    %c0_36 = arith.constant 0 : index
    %23 = vector.load %arg4[%c0_34, %c0_35, %c0_36] : memref<9x128x128xbf16, #tpu.memory_space<vmem>>, vector<1x128x128xbf16>
    %24 = vector.shape_cast %23 : vector<1x128x128xbf16> to vector<128x128xbf16>
    %cst_37 = arith.constant dense<0.000000e+00> : vector<256x128xf32>
    %25 = tpu.matmul %22, %24, %cst_37 {dimension_numbers = #tpu.dot_dimension_numbers<[1], [0], [0], [1], [0, 0, 1, 1], [], []>} : vector<256x128xbf16>, vector<128x128xbf16>, vector<256x128xf32> -> vector<256x128xf32>
    %c0_38 = arith.constant 0 : index
    %c0_39 = arith.constant 0 : index
    %c1_40 = arith.constant 1 : index
    %c0_41 = arith.constant 0 : index
    %26 = vector.load %arg9[%c0_38, %c0_39, %c1_40, %c0_41] : memref<1x18x18x128xf32, #tpu.memory_space<vmem>>, vector<1x16x16x128xf32>
    %27 = vector.shape_cast %26 : vector<1x16x16x128xf32> to vector<256x128xf32>
    %28 = arith.truncf %27 : vector<256x128xf32> to vector<256x128xbf16>
    %c1_42 = arith.constant 1 : index
    %c0_43 = arith.constant 0 : index
    %c0_44 = arith.constant 0 : index
    %29 = vector.load %arg4[%c1_42, %c0_43, %c0_44] : memref<9x128x128xbf16, #tpu.memory_space<vmem>>, vector<1x128x128xbf16>
    %30 = vector.shape_cast %29 : vector<1x128x128xbf16> to vector<128x128xbf16>
    %cst_45 = arith.constant dense<0.000000e+00> : vector<256x128xf32>
    %31 = tpu.matmul %28, %30, %cst_45 {dimension_numbers = #tpu.dot_dimension_numbers<[1], [0], [0], [1], [0, 0, 1, 1], [], []>} : vector<256x128xbf16>, vector<128x128xbf16>, vector<256x128xf32> -> vector<256x128xf32>
    %32 = arith.addf %25, %31 : vector<256x128xf32>
    %c0_46 = arith.constant 0 : index
    %c0_47 = arith.constant 0 : index
    %c2 = arith.constant 2 : index
    %c0_48 = arith.constant 0 : index
    %33 = vector.load %arg9[%c0_46, %c0_47, %c2, %c0_48] : memref<1x18x18x128xf32, #tpu.memory_space<vmem>>, vector<1x16x16x128xf32>
    %34 = vector.shape_cast %33 : vector<1x16x16x128xf32> to vector<256x128xf32>
    %35 = arith.truncf %34 : vector<256x128xf32> to vector<256x128xbf16>
    %c2_49 = arith.constant 2 : index
    %c0_50 = arith.constant 0 : index
    %c0_51 = arith.constant 0 : index
    %36 = vector.load %arg4[%c2_49, %c0_50, %c0_51] : memref<9x128x128xbf16, #tpu.memory_space<vmem>>, vector<1x128x128xbf16>
    %37 = vector.shape_cast %36 : vector<1x128x128xbf16> to vector<128x128xbf16>
    %cst_52 = arith.constant dense<0.000000e+00> : vector<256x128xf32>
    %38 = tpu.matmul %35, %37, %cst_52 {dimension_numbers = #tpu.dot_dimension_numbers<[1], [0], [0], [1], [0, 0, 1, 1], [], []>} : vector<256x128xbf16>, vector<128x128xbf16>, vector<256x128xf32> -> vector<256x128xf32>
    %39 = arith.addf %32, %38 : vector<256x128xf32>
    %c0_53 = arith.constant 0 : index
    %c1_54 = arith.constant 1 : index
    %c0_55 = arith.constant 0 : index
    %c0_56 = arith.constant 0 : index
    %40 = vector.load %arg9[%c0_53, %c1_54, %c0_55, %c0_56] : memref<1x18x18x128xf32, #tpu.memory_space<vmem>>, vector<1x16x16x128xf32>
    %41 = vector.shape_cast %40 : vector<1x16x16x128xf32> to vector<256x128xf32>
    %42 = arith.truncf %41 : vector<256x128xf32> to vector<256x128xbf16>
    %c3 = arith.constant 3 : index
    %c0_57 = arith.constant 0 : index
    %c0_58 = arith.constant 0 : index
    %43 = vector.load %arg4[%c3, %c0_57, %c0_58] : memref<9x128x128xbf16, #tpu.memory_space<vmem>>, vector<1x128x128xbf16>
    %44 = vector.shape_cast %43 : vector<1x128x128xbf16> to vector<128x128xbf16>
    %cst_59 = arith.constant dense<0.000000e+00> : vector<256x128xf32>
    %45 = tpu.matmul %42, %44, %cst_59 {dimension_numbers = #tpu.dot_dimension_numbers<[1], [0], [0], [1], [0, 0, 1, 1], [], []>} : vector<256x128xbf16>, vector<128x128xbf16>, vector<256x128xf32> -> vector<256x128xf32>
    %46 = arith.addf %39, %45 : vector<256x128xf32>
    %c0_60 = arith.constant 0 : index
    %c1_61 = arith.constant 1 : index
    %c1_62 = arith.constant 1 : index
    %c0_63 = arith.constant 0 : index
    %47 = vector.load %arg9[%c0_60, %c1_61, %c1_62, %c0_63] : memref<1x18x18x128xf32, #tpu.memory_space<vmem>>, vector<1x16x16x128xf32>
    %48 = vector.shape_cast %47 : vector<1x16x16x128xf32> to vector<256x128xf32>
    %49 = arith.truncf %48 : vector<256x128xf32> to vector<256x128xbf16>
    %c4 = arith.constant 4 : index
    %c0_64 = arith.constant 0 : index
    %c0_65 = arith.constant 0 : index
    %50 = vector.load %arg4[%c4, %c0_64, %c0_65] : memref<9x128x128xbf16, #tpu.memory_space<vmem>>, vector<1x128x128xbf16>
    %51 = vector.shape_cast %50 : vector<1x128x128xbf16> to vector<128x128xbf16>
    %cst_66 = arith.constant dense<0.000000e+00> : vector<256x128xf32>
    %52 = tpu.matmul %49, %51, %cst_66 {dimension_numbers = #tpu.dot_dimension_numbers<[1], [0], [0], [1], [0, 0, 1, 1], [], []>} : vector<256x128xbf16>, vector<128x128xbf16>, vector<256x128xf32> -> vector<256x128xf32>
    %53 = arith.addf %46, %52 : vector<256x128xf32>
    %c0_67 = arith.constant 0 : index
    %c1_68 = arith.constant 1 : index
    %c2_69 = arith.constant 2 : index
    %c0_70 = arith.constant 0 : index
    %54 = vector.load %arg9[%c0_67, %c1_68, %c2_69, %c0_70] : memref<1x18x18x128xf32, #tpu.memory_space<vmem>>, vector<1x16x16x128xf32>
    %55 = vector.shape_cast %54 : vector<1x16x16x128xf32> to vector<256x128xf32>
    %56 = arith.truncf %55 : vector<256x128xf32> to vector<256x128xbf16>
    %c5 = arith.constant 5 : index
    %c0_71 = arith.constant 0 : index
    %c0_72 = arith.constant 0 : index
    %57 = vector.load %arg4[%c5, %c0_71, %c0_72] : memref<9x128x128xbf16, #tpu.memory_space<vmem>>, vector<1x128x128xbf16>
    %58 = vector.shape_cast %57 : vector<1x128x128xbf16> to vector<128x128xbf16>
    %cst_73 = arith.constant dense<0.000000e+00> : vector<256x128xf32>
    %59 = tpu.matmul %56, %58, %cst_73 {dimension_numbers = #tpu.dot_dimension_numbers<[1], [0], [0], [1], [0, 0, 1, 1], [], []>} : vector<256x128xbf16>, vector<128x128xbf16>, vector<256x128xf32> -> vector<256x128xf32>
    %60 = arith.addf %53, %59 : vector<256x128xf32>
    %c0_74 = arith.constant 0 : index
    %c2_75 = arith.constant 2 : index
    %c0_76 = arith.constant 0 : index
    %c0_77 = arith.constant 0 : index
    %61 = vector.load %arg9[%c0_74, %c2_75, %c0_76, %c0_77] : memref<1x18x18x128xf32, #tpu.memory_space<vmem>>, vector<1x16x16x128xf32>
    %62 = vector.shape_cast %61 : vector<1x16x16x128xf32> to vector<256x128xf32>
    %63 = arith.truncf %62 : vector<256x128xf32> to vector<256x128xbf16>
    %c6 = arith.constant 6 : index
    %c0_78 = arith.constant 0 : index
    %c0_79 = arith.constant 0 : index
    %64 = vector.load %arg4[%c6, %c0_78, %c0_79] : memref<9x128x128xbf16, #tpu.memory_space<vmem>>, vector<1x128x128xbf16>
    %65 = vector.shape_cast %64 : vector<1x128x128xbf16> to vector<128x128xbf16>
    %cst_80 = arith.constant dense<0.000000e+00> : vector<256x128xf32>
    %66 = tpu.matmul %63, %65, %cst_80 {dimension_numbers = #tpu.dot_dimension_numbers<[1], [0], [0], [1], [0, 0, 1, 1], [], []>} : vector<256x128xbf16>, vector<128x128xbf16>, vector<256x128xf32> -> vector<256x128xf32>
    %67 = arith.addf %60, %66 : vector<256x128xf32>
    %c0_81 = arith.constant 0 : index
    %c2_82 = arith.constant 2 : index
    %c1_83 = arith.constant 1 : index
    %c0_84 = arith.constant 0 : index
    %68 = vector.load %arg9[%c0_81, %c2_82, %c1_83, %c0_84] : memref<1x18x18x128xf32, #tpu.memory_space<vmem>>, vector<1x16x16x128xf32>
    %69 = vector.shape_cast %68 : vector<1x16x16x128xf32> to vector<256x128xf32>
    %70 = arith.truncf %69 : vector<256x128xf32> to vector<256x128xbf16>
    %c7 = arith.constant 7 : index
    %c0_85 = arith.constant 0 : index
    %c0_86 = arith.constant 0 : index
    %71 = vector.load %arg4[%c7, %c0_85, %c0_86] : memref<9x128x128xbf16, #tpu.memory_space<vmem>>, vector<1x128x128xbf16>
    %72 = vector.shape_cast %71 : vector<1x128x128xbf16> to vector<128x128xbf16>
    %cst_87 = arith.constant dense<0.000000e+00> : vector<256x128xf32>
    %73 = tpu.matmul %70, %72, %cst_87 {dimension_numbers = #tpu.dot_dimension_numbers<[1], [0], [0], [1], [0, 0, 1, 1], [], []>} : vector<256x128xbf16>, vector<128x128xbf16>, vector<256x128xf32> -> vector<256x128xf32>
    %74 = arith.addf %67, %73 : vector<256x128xf32>
    %c0_88 = arith.constant 0 : index
    %c2_89 = arith.constant 2 : index
    %c2_90 = arith.constant 2 : index
    %c0_91 = arith.constant 0 : index
    %75 = vector.load %arg9[%c0_88, %c2_89, %c2_90, %c0_91] : memref<1x18x18x128xf32, #tpu.memory_space<vmem>>, vector<1x16x16x128xf32>
    %76 = vector.shape_cast %75 : vector<1x16x16x128xf32> to vector<256x128xf32>
    %77 = arith.truncf %76 : vector<256x128xf32> to vector<256x128xbf16>
    %c8 = arith.constant 8 : index
    %c0_92 = arith.constant 0 : index
    %c0_93 = arith.constant 0 : index
    %78 = vector.load %arg4[%c8, %c0_92, %c0_93] : memref<9x128x128xbf16, #tpu.memory_space<vmem>>, vector<1x128x128xbf16>
    %79 = vector.shape_cast %78 : vector<1x128x128xbf16> to vector<128x128xbf16>
    %cst_94 = arith.constant dense<0.000000e+00> : vector<256x128xf32>
    %80 = tpu.matmul %77, %79, %cst_94 {dimension_numbers = #tpu.dot_dimension_numbers<[1], [0], [0], [1], [0, 0, 1, 1], [], []>} : vector<256x128xbf16>, vector<128x128xbf16>, vector<256x128xf32> -> vector<256x128xf32>
    %81 = arith.addf %74, %80 : vector<256x128xf32>
    %c0_95 = arith.constant 0 : index
    %c0_96 = arith.constant 0 : index
    %82 = vector.load %arg5[%c0_95, %c0_96] : memref<1x128xf32, #tpu.memory_space<vmem>>, vector<1x128xf32>
    %83 = vector.broadcast %82 : vector<1x128xf32> to vector<256x128xf32>
    %84 = arith.addf %81, %83 : vector<256x128xf32>
    %cst_97 = arith.constant 0.000000e+00 : f32
    %85 = vector.broadcast %cst_97 : f32 to vector<256x128xf32>
    %86 = arith.maximumf %84, %85 : vector<256x128xf32>
    %87 = arith.truncf %86 : vector<256x128xf32> to vector<256x128xbf16>
    %c0_98 = arith.constant 0 : index
    %c0_99 = arith.constant 0 : index
    %88 = vector.load %arg6[%c0_98, %c0_99] : memref<128x128xbf16, #tpu.memory_space<vmem>>, vector<128x128xbf16>
    %cst_100 = arith.constant dense<0.000000e+00> : vector<256x128xf32>
    %89 = tpu.matmul %87, %88, %cst_100 {dimension_numbers = #tpu.dot_dimension_numbers<[1], [0], [0], [1], [0, 0, 1, 1], [], []>} : vector<256x128xbf16>, vector<128x128xbf16>, vector<256x128xf32> -> vector<256x128xf32>
    %c0_101 = arith.constant 0 : index
    %c0_102 = arith.constant 0 : index
    %90 = vector.load %arg7[%c0_101, %c0_102] : memref<1x128xf32, #tpu.memory_space<vmem>>, vector<1x128xf32>
    %91 = vector.broadcast %90 : vector<1x128xf32> to vector<256x128xf32>
    %92 = arith.addf %89, %91 : vector<256x128xf32>
    %cst_103 = arith.constant 0.000000e+00 : f32
    %93 = vector.broadcast %cst_103 : f32 to vector<256x128xf32>
    %94 = arith.maximumf %92, %93 : vector<256x128xf32>
    %c0_104 = arith.constant 0 : index
    %c0_105 = arith.constant 0 : index
    %c0_106 = arith.constant 0 : index
    %c0_107 = arith.constant 0 : index
    %95 = vector.load %arg1[%c0_104, %c0_105, %c0_106, %c0_107] : memref<1x16x16x128xf32, #tpu.memory_space<vmem>>, vector<1x16x16x128xf32>
    %96 = vector.shape_cast %95 : vector<1x16x16x128xf32> to vector<256x128xf32>
    %97 = arith.addf %94, %96 : vector<256x128xf32>
    %cst_108 = arith.constant 0.000000e+00 : f32
    %98 = vector.broadcast %cst_108 : f32 to vector<256x128xf32>
    %99 = arith.maximumf %97, %98 : vector<256x128xf32>
    %100 = vector.shape_cast %99 : vector<256x128xf32> to vector<1x16x16x128xf32>
    %c0_109 = arith.constant 0 : index
    %c0_110 = arith.constant 0 : index
    %c0_111 = arith.constant 0 : index
    %c0_112 = arith.constant 0 : index
    %101 = vector.load %arg8[%c0_109, %c0_110, %c0_111, %c0_112] : memref<1x16x16x128xf32, #tpu.memory_space<vmem>>, vector<1x16x16x128xf32>
    tpu.vector_store %arg8[%c0_109, %c0_110, %c0_111, %c0_112], %100 {strides = array<i32>} : memref<1x16x16x128xf32, #tpu.memory_space<vmem>>, vector<1x16x16x128xf32>,
    return
  }
  func.func @transform_0(%arg0: i32) -> (i32, i32, i32, i32) {
    %c0_i32 = arith.constant 0 : i32
    %c0_i32_0 = arith.constant 0 : i32
    %c0_i32_1 = arith.constant 0 : i32
    %c0_i32_2 = arith.constant 0 : i32
    return %arg0, %c0_i32, %c0_i32_0, %c0_i32_1 : i32, i32, i32, i32
  }
  func.func @transform_1(%arg0: i32) -> (i32, i32) {
    %c0_i32 = arith.constant 0 : i32
    %c0_i32_0 = arith.constant 0 : i32
    %c0_i32_1 = arith.constant 0 : i32
    return %c0_i32, %c0_i32_0 : i32, i32
  }
  func.func @transform_2(%arg0: i32) -> (i32, i32) {
    %c0_i32 = arith.constant 0 : i32
    %c0_i32_0 = arith.constant 0 : i32
    %c0_i32_1 = arith.constant 0 : i32
    return %c0_i32, %c0_i32_0 : i32, i32
  }
  func.func @transform_3(%arg0: i32) -> (i32, i32, i32) {
    %c0_i32 = arith.constant 0 : i32
    %c0_i32_0 = arith.constant 0 : i32
    %c0_i32_1 = arith.constant 0 : i32
    %c0_i32_2 = arith.constant 0 : i32
    return %c0_i32, %c0_i32_0, %c0_i32_1 : i32, i32, i32
  }
  func.func @transform_4(%arg0: i32) -> (i32, i32) {
    %c0_i32 = arith.constant 0 : i32
    %c0_i32_0 = arith.constant 0 : i32
    %c0_i32_1 = arith.constant 0 : i32
    return %c0_i32, %c0_i32_0 : i32, i32
  }
  func.func @transform_5(%arg0: i32) -> (i32, i32) {
    %c0_i32 = arith.constant 0 : i32
    %c0_i32_0 = arith.constant 0 : i32
    %c0_i32_1 = arith.constant 0 : i32
    return %c0_i32, %c0_i32_0 : i32, i32
  }
  func.func @transform_6(%arg0: i32) -> (i32, i32) {
    %c0_i32 = arith.constant 0 : i32
    %c0_i32_0 = arith.constant 0 : i32
    %c0_i32_1 = arith.constant 0 : i32
    return %c0_i32, %c0_i32_0 : i32, i32
  }
  func.func @transform_7(%arg0: i32) -> (i32, i32, i32, i32) {
    %c0_i32 = arith.constant 0 : i32
    %c0_i32_0 = arith.constant 0 : i32
    %c0_i32_1 = arith.constant 0 : i32
    %c0_i32_2 = arith.constant 0 : i32
    return %arg0, %c0_i32, %c0_i32_0, %c0_i32_1 : i32, i32, i32, i32
  }
}

</mosaic_0001>

<bundles_post_ra>
// kernel: tpu_custom_call.1
= control target key start
LH: loop header
LB: loop body
LE: loop exit
PB: predicated region body
PF: predicated region fallthrough
CT: control target
= control target key end

     0   :  { %12 = vsyncpa [#allocation4], 0  ;;  %s6454_s0 = inlined_call_operand.hbm [shape: f32[2,16,16,128], index: 0, kind: input, shape index: {}]   ;;  %s6455_s1 = inlined_call_operand.hbm [shape: bf16[128,128], index: 1, kind: input, shape index: {}]   ;;  %s6456_s2 = inlined_call_operand.vmem [shape: f32[1,128], index: 2, kind: input, shape index: {}]   ;;  %s6457_s3 = inlined_call_operand.hbm [shape: bf16[9,128,128], index: 3, kind: input, shape index: {}]   ;;  %s6458_s4 = inlined_call_operand.vmem [shape: f32[1,128], index: 4, kind: input, shape index: {}]   ;;  %s6459_s5 = inlined_call_operand.hbm [shape: bf16[128,128], index: 5, kind: input, shape index: {}]   ;;  %s6460_s6 = inlined_call_operand.vmem [shape: f32[1,128], index: 6, kind: input, shape index: {}]   ;;  %s6461_s7 = inlined_call_operand.hbm [shape: f32[2,16,16,128], index: 7, kind: output, shape index: {}]  }
   0x1   :  { %14 = vsyncpa [#allocation4 + $0x1], 0 }
   0x2   :  { %15 = vsyncpa [#allocation7], 0 }
   0x3   :  { %16 = vsyncpa [#allocation10], 0 }
   0x4   :  { %17 = vsyncpa [#allocation5], 0 }
   0x5   :  { %19 = vsyncpa [#allocation5 + $0x1], 0  ;;  %s5607_s24 = smov 0   ;;  %s5609_s25 = smov 0  }
   0x6   :  { %s5611_s26 = smov 0   ;;  %s5613_s27 = smov 0  }
   0x7 LB: > { %s5628_s28 = sadd.s32 4294967295, %s5553_s27   ;;  %s4015_s29 = sadd.s32 4294967294, %s5553_s27   ;;  %s5553_s27 = sphi %s5613_s27, %s6487_s27   ;;  %s5549_s26 = sphi %s5611_s26, %s6486_s26   ;;  %s5545_s25 = sphi %s5609_s25, %s6485_s25   ;;  %s5541_s24 = sphi %s5607_s24, %s6484_s24  }
   0x8   : > { %p45_p0 = scmp.ne.s32.totalorder %s5545_s25, %s5541_s24  ;;  %p6462_p1 = scmp.eq.s32.totalorder %s5628_s28, 0 }
   0x9   : > { %p201_p3 = scmp.eq.s32.totalorder %s4015_s29, 1  ;;  %p4016_p5 = scmp.ge.s32.totalorder %s5553_s27, 1 }
   0xa   : > { %p5637_p4 = por %p6462_p1, %p45_p0  ;;  %p208_p7 = scmp.lt.s32.totalorder %s5553_s27, 3 }
   0xb   : > { %p5642_p6 = por %p201_p3, %p45_p0  ;;  %s5555_s10 = smov [#allocation6]  }
   0xc   : > { %s6466_s30 = scalar_select %p5637_p4, 1, 0 }
   0xd   : > { %s6467_s8 = scalar_select %p5642_p6, 1, 0 }
   0xe   : > { %p5647_p8 = pnand %p4016_p5, %p208_p7  ;;  %s220_s11 = sshll.u32 %s5555_s10, 4  ;;  %s5651_s11 = int_to_ptr.vmem [resolvable:$true] %s220_s11 }
   0xf   : > { %6468 = sst [smem:[#allocation16_spill]] %s6467_s8  ;;  %s5556_s13 = smov [#allocation8]  }
  0x10   : > { %s6469_s9 = scalar_select %p5647_p8, 1, 0 }
  0x11   : > { %p5208_p9 = pneg %p5647_p8  ;;  %s236_s14 = sshll.u32 %s5556_s13, 4  ;;  %s5662_s14 = int_to_ptr.vmem [resolvable:$true] %s236_s14 }
  0x12   : > { %s5557_s15 = smov [#allocation9]   ;;  %s5365_s19 = scalar_lea.hbm %s6455_s1, 1024 }
  0x13   : > { %p5658_p11 = pnand %p5208_p9, %p6462_p1  ;;  %s5664_s16 = sshll.u32 %s5557_s15, 4  ;;  %s253_s16 = int_to_ptr.vmem [resolvable:$true] %s5664_s16 }
  0x14   : > { %p5366_p12 = scmp.ne.s32.totalorder %s6455_s1, %s5365_s19  ;;  %p5372_p5 = scmp.lt.u32.totalorder %s5365_s19, %s6455_s1 }
  0x15   : > { %p5674_p13 = pneg %p5658_p11 }
  0x17   : > { %p5368_p0 = pnand %p5674_p13, %p5366_p12 }
  0x19   : > { %p5369_p3 = pneg %p5368_p0 }
  0x1b   : > { %p5374_p7 = pnand %p5372_p5, %p5369_p3 }
  0x1d   : > { %5377 = shalt.err (!%p5374_p7)
}
  0x1e   : > { %s5378_s10 = scalar_lea.vmem %s5651_s11, 1024  ;;  %p5386_p2 = scmp.lt.s32.totalorder %s5651_s11, %s5651_s11 }
  0x1f   : > { %p5379_p9 = scmp.ne.s32.totalorder %s5651_s11, %s5378_s10  ;;  %p5387_p6 = scmp.lt.s32.totalorder %s5378_s10, %s5378_s10 }
  0x21   : > { %p5381_p10 = pnand %p5379_p9, %p5674_p13  ;;  %p5388_p12 = por %p5387_p6, %p5386_p2 }
  0x23   : > { %p5382_p1 = pneg %p5381_p10 }
  0x25   : > { %p5389_p0 = pnand %p5388_p12, %p5382_p1 }
  0x27   : > { %5392 = shalt.err (!%p5389_p0)
}
  0x28   : > { %s5558_s13 = smov 64   ;;  %s5559_s15 = smov 4  }
  0x29   : > { %5211 = dma.hbm_to_vmem [thread:$0]  (!%p5658_p11), %s6455_s1, 1024, %s5651_s11, [#allocation7], %s5558_s13, %s5558_s13, %s5559_s15  }
  0x2a   : > { %s5393_s21 = scalar_lea.hbm %s6457_s3, 9216 }
  0x2b   : > { %p5394_p1 = scmp.ne.s32.totalorder %s6457_s3, %s5393_s21  ;;  %p5400_p10 = scmp.lt.u32.totalorder %s5393_s21, %s6457_s3 }
  0x2d   : > { %p5396_p2 = pnand %p5394_p1, %p5674_p13 }
  0x2f   : > { %p5397_p6 = pneg %p5396_p2 }
  0x31   : > { %p5402_p3 = pnand %p5400_p10, %p5397_p6 }
  0x33   : > { %5405 = shalt.err (!%p5402_p3)
}
  0x34   : > { %s5406_s11 = scalar_lea.vmem %s5662_s14, 9216  ;;  %p5414_p12 = scmp.lt.s32.totalorder %s5662_s14, %s5662_s14 }
  0x35   : > { %p5407_p5 = scmp.ne.s32.totalorder %s5662_s14, %s5406_s11  ;;  %p5415_p0 = scmp.lt.s32.totalorder %s5406_s11, %s5406_s11 }
  0x37   : > { %p5409_p7 = pnand %p5407_p5, %p5674_p13  ;;  %p5416_p1 = por %p5415_p0, %p5414_p12 }
  0x39   : > { %p5410_p9 = pneg %p5409_p7 }
  0x3b   : > { %p5417_p2 = pnand %p5416_p1, %p5410_p9 }
  0x3d   : > { %5420 = shalt.err (!%p5417_p2)
}
  0x3e   : > { %5214 = dma.hbm_to_vmem [thread:$0]  (!%p5658_p11), %s6457_s3, 9216, %s5662_s14, [#allocation7], %s5558_s13, %s5558_s13, %s5559_s15  }
  0x3f   : > { %s5421_s20 = scalar_lea.hbm %s6459_s5, 1024 }
  0x40   : > { %p5422_p6 = scmp.ne.s32.totalorder %s6459_s5, %s5421_s20  ;;  %p5428_p5 = scmp.lt.u32.totalorder %s5421_s20, %s6459_s5 }
  0x42   : > { %p5424_p10 = pnand %p5422_p6, %p5674_p13 }
  0x44   : > { %p5425_p3 = pneg %p5424_p10 }
  0x46   : > { %p5430_p7 = pnand %p5428_p5, %p5425_p3 }
  0x48   : > { %5433 = shalt.err (!%p5430_p7)
}
  0x49   : > { %s5434_s11 = scalar_lea.vmem %s253_s16, 1024  ;;  %p5442_p1 = scmp.lt.s32.totalorder %s253_s16, %s253_s16 }
  0x4a   : > { %p5435_p9 = scmp.ne.s32.totalorder %s253_s16, %s5434_s11  ;;  %p5443_p2 = scmp.lt.s32.totalorder %s5434_s11, %s5434_s11 }
  0x4c   : > { %p5437_p12 = pnand %p5435_p9, %p5674_p13  ;;  %p5444_p4 = por %p5443_p2, %p5442_p1 }
  0x4e   : > { %p5438_p0 = pneg %p5437_p12 }
  0x50   : > { %p5445_p8 = pnand %p5444_p4, %p5438_p0 }
  0x52   : > { %5448 = shalt.err (!%p5445_p8)
}
  0x53   : > { %5217 = dma.hbm_to_vmem [thread:$0]  (!%p5658_p11), %s6459_s5, 1024, %s253_s16, [#allocation10], %s5558_s13, %s5558_s13, %s5559_s15  }
  0x54   : > { %s5747_s22 = sadd.s32 1, %s5553_s27   ;;  %s32_s17 = sadd.s32 1, %s5549_s26 }
  0x55   : > { %s29_s12 = ssub.s32 %s5553_s27, %s5747_s22  ;;  %p39_p8 = scmp.ne.s32.totalorder %s5549_s26, %s5545_s25 }
  0x56   : > { %p30_p4 = scmp.eq.s32.totalorder %s29_s12, 0  ;;  %p40_p13 = scmp.eq.s32.totalorder %s5553_s27, 0 }
  0x57   : > { %p5229_p6 = scmp.lt.s32.totalorder %s5553_s27, 2  ;;  %p6472_p3 = scmp.eq.s32.totalorder %s5628_s28, 1 }
  0x58   : > { %s5757_s18 = scalar_select %p30_p4, %s5549_s26, %s32_s17  }
  0x59   : > { %p41_p10 = por %p40_p13, %p39_p8  ;;  %p5761_p5 = por %p6472_p3, %p39_p8 }
  0x5a   : > { %s269_s20 = sand.u32 1, %s5549_s26   ;;  %s4126_s21 = sshll.u32 %s5553_s27, 12 }
  0x5b   : > { %s4021_s16 = sshll.u32 %s269_s20, 8  ;;  %s5770_s23 = scalar_lea.hbm %s6454_s0, %s4126_s21 }
  0x5c   : > { %s273_s29 = scalar_lea.vmem [#allocation3], %s4021_s16  ;;  %p5772_p11 = pnand %p5229_p6, %p41_p10 }
  0x5d   : > { %s280_s10 = sshll.u32 %s273_s29, 4  ;;  %s5778_s14 = scalar_lea.sflag [#allocation4], %s269_s20  ;;  %s5776_s10 = int_to_ptr.vmem [resolvable:$true] %s280_s10 }
  0x5e   : > { %s5449_s8 = scalar_lea.hbm %s5770_s23, 4096  ;;  %p5451_p9 = pneg %p5772_p11 }
  0x5f   : > { %p5450_p7 = scmp.ne.s32.totalorder %s5770_s23, %s5449_s8  ;;  %s5454_s21 = scalar_lea.hbm %s6454_s0, 8192 }
  0x60   : > { %p5455_p1 = scmp.lt.u32.totalorder %s5770_s23, %s6454_s0  ;;  %p5456_p2 = scmp.lt.u32.totalorder %s5454_s21, %s5449_s8 }
  0x61   : > { %p5452_p12 = pnand %p5451_p9, %p5450_p7  ;;  %p5458_p8 = scmp.lt.u32.totalorder %s5449_s8, %s5770_s23 }
  0x62   : > { %p5457_p4 = por %p5456_p2, %p5455_p1 }
  0x63   : > { %p5453_p0 = pneg %p5452_p12 }
  0x64   : > { %p5459_p13 = por %p5458_p8, %p5457_p4 }
  0x66   : > { %p5460_p6 = pnand %p5459_p13, %p5453_p0 }
  0x68   : > { %5463 = shalt.err (!%p5460_p6)
}
  0x69   : > { %s5464_s20 = scalar_lea.vmem %s5776_s10, 4096  ;;  %s5560_s15 = smov [#allocation3]  }
  0x6a   : > { %p5465_p10 = scmp.ne.s32.totalorder %s5776_s10, %s5464_s20  ;;  %s5469_s29 = sshll.u32 %s5560_s15, 4  ;;  %s5470_s29 = int_to_ptr.vmem [resolvable:$false] %s5469_s29 }
  0x6b   : > { %s5471_s12 = scalar_lea.vmem %s5470_s29, 8192  ;;  %p5472_p12 = scmp.lt.s32.totalorder %s5776_s10, %s5470_s29 }
  0x6c   : > { %p5467_p3 = pnand %p5465_p10, %p5451_p9  ;;  %p5473_p1 = scmp.lt.s32.totalorder %s5471_s12, %s5464_s20 }
  0x6e   : > { %p5468_p7 = pneg %p5467_p3  ;;  %p5474_p2 = por %p5473_p1, %p5472_p12 }
  0x70   : > { %p5475_p4 = pnand %p5474_p2, %p5468_p7 }
  0x72   : > { %5478 = shalt.err (!%p5475_p4)
}
  0x73   : > { %s5561_s8 = smov 128   ;;  %s5562_s17 = smov 8  }
  0x74   : > { %5221 = dma.hbm_to_vmem [thread:$0]  (!%p5772_p11), %s5770_s23, 4096, %s5776_s10, %s5778_s14, %s5561_s8, %s5561_s8, %s5562_s17  }
  0x75   : > { %p6475_p9 = scmp.ne.s32.totalorder %s6469_s9, 0 }
  0x76   : > { %s5809_s21 = sand.u32 (!%p6475_p9), 1, %s5545_s25   ;;  %p6476_p0 = scmp.ne.s32.totalorder (!%p6475_p9), %s6466_s30, 0 }
  0x77   : > { %292 = sbr.rel (%p6475_p9) target bundleno = 1235 (0x4d3), region = 48  ;;  %s4025_s16 = sshll.u32 (!%p6475_p9), %s5809_s21, 8 }
  0x78   : > { %s295_s13 = scalar_lea.sflag (!%p6475_p9), [#allocation4], %s5809_s21  ;;  %s5815_s20 = scalar_lea.vmem (!%p6475_p9), [#allocation3], %s4025_s16 }
  0x7e   : > { %5524 = dma.done.wait (%p6476_p0), %s295_s13, 4096  }
  0x7f   : > { %5526 = vsyncadd (%p6476_p0), %s295_s13, 4294963200  ;;  %p6477_p11 = scmp.eq.s32.totalorder %s5628_s28, 0 }
  0x81   : > { %5528 = dma.done.wait (%p6477_p11), [#allocation7], 10240   ;;  %p6478_p8 = pmov %p6477_p11 }
  0x83   : > { %5530 = vsyncadd (%p6478_p8), [#allocation7], 4294957056  ;;  %p6479_p13 = pmov %p6478_p8 }
  0x84   : > { %p6480_p6 = pmov %p6478_p8 }
  0x85   : > { %5532 = dma.done.wait (%p6479_p13), [#allocation10], 1024  }
  0x86   : > { %5534 = vsyncadd (%p6480_p6), [#allocation10], 4294966272  ;;  %v5276_v0 = vld [vmem:[#allocation6] sm:$0xff]   ;;  %v5277_v1 = vld [vmem:[#allocation6 + $0x8] sm:$0xff]   ;;  %v5563_v62 = vmov 0.0   ;;  %s6313_s15 = scalar_lea.vmem [#allocation11], %s4025_s16 }
  0x87   : > { %4392 = vmatprep.subr.bf16.mxu0 %v5276_v0  ;;  %v5278_v2 = vld [vmem:[#allocation6 + $0x10] sm:$0xff]   ;;  %v5279_v3 = vld [vmem:[#allocation6 + $0x18] sm:$0xff]   ;;  %v342_v4 = vld [vmem:[%s5815_s20] sm:$0xff]  ;;  %654 = vst [vmem:[#allocation2] sm:$0xff] %v5563_v62  ;;  %s4127_s29 = sshll.u32 %s5628_s28, 12  ;;  %s3913_s12 = sshll.u32 %s6313_s15, 4  ;;  %s6407_s12 = int_to_ptr.vmem [resolvable:$true] %s3913_s12 }
  0x88   : > { %4393 = vmatpush3.bf16.msra.mxu0 %v5276_v0  ;;  %v343_v5 = vld [vmem:[%s5815_s20 + $0x8] sm:$0xff]  ;;  %v5280_v7 = vld [vmem:[#allocation6 + $0x20] sm:$0xff]   ;;  %v5282_v9 = vld [vmem:[#allocation6 + $0x30] sm:$0xff]   ;;  %655 = vst [vmem:[#allocation2 + $0x8] sm:$0xff] %v5563_v62  ;;  %s6405_s16 = scalar_lea.hbm %s6461_s7, %s4127_s29  ;;  %s3900_s28 = scalar_lea.sflag [#allocation5], %s5809_s21 }
  0x89   : > { %4394 = vmatprep.subr.bf16.mxu0 %v5277_v1  ;;  %v374_v6 = vpack.c.bf16 %v343_v5, %v342_v4  ;;  %v5281_v8 = vld [vmem:[#allocation6 + $0x28] sm:$0xff]   ;;  %v5283_v10 = vld [vmem:[#allocation6 + $0x38] sm:$0xff]   ;;  %v344_v11 = vld [vmem:[%s5815_s20 + $0x10] sm:$0xff]  ;;  %656 = vst [vmem:[#allocation2 + $0x10] sm:$0x3] %v5563_v62  ;;  %s5479_s13 = scalar_lea.vmem %s6407_s12, 4096 }
  0x8a   : > { %v345_v12 = vld [vmem:[%s5815_s20 + $0x18] sm:$0xff]  ;;  %v346_v13 = vld [vmem:[%s5815_s20 + $0x20] sm:$0xff]  ;;  %v347_v14 = vld [vmem:[%s5815_s20 + $0x28] sm:$0xff]  ;;  %658 = vst [vmem:[#allocation2 + $0x198] sm:$0xff] %v5563_v62  ;;  %p5480_p10 = scmp.ne.s32.totalorder %s6407_s12, %s5479_s13 }
  0x8b   : > { %4408 = vmatprep.mubr.bf16.mxu0 %v374_v6  ;;  %v5284_v15 = vld [vmem:[#allocation8 + $0x40] sm:$0xff]   ;;  %v375_v16 = vpack.c.bf16 %v345_v12, %v344_v11  ;;  %v5285_v17 = vld [vmem:[#allocation8 + $0x48] sm:$0xff]   ;;  %v376_v18 = vpack.c.bf16 %v347_v14, %v346_v13  ;;  %v348_v19 = vld [vmem:[%s5815_s20 + $0x30] sm:$0xff]  ;;  %659 = vst [vmem:[#allocation2 + $0x1a0] sm:$0xff] %v5563_v62 }
  0x8c   : > { %4395 = vmatpush3.bf16.msra.mxu0 %v5277_v1  ;;  %v349_v20 = vld [vmem:[%s5815_s20 + $0x38] sm:$0xff]  ;;  %v350_v21 = vld [vmem:[%s5815_s20 + $0x40] sm:$0xff]  ;;  %v351_v22 = vld [vmem:[%s5815_s20 + $0x48] sm:$0xff]  ;;  %660 = vst [vmem:[#allocation2 + $0x1a8] sm:$0x3] %v5563_v62  ;;  %p5481_p3 = pnand %p5480_p10, %p5761_p5 }
  0x8d   : > { %4396 = vmatprep.subr.bf16.mxu0 %v5278_v2  ;;  %v5286_v23 = vld [vmem:[#allocation8 + $0x50] sm:$0xff]   ;;  %v377_v24 = vpack.c.bf16 %v349_v20, %v348_v19  ;;  %v5287_v25 = vld [vmem:[#allocation8 + $0x58] sm:$0xff]   ;;  %v378_v26 = vpack.c.bf16 %v351_v22, %v350_v21  ;;  %v354_v29 = vld [vmem:[%s5815_s20 + $0x60] sm:$0xff]  ;;  %662 = vst [vmem:[#allocation2 + $0x18] sm:$0x1] %v5563_v62 }
  0x8e   : > { %v352_v27 = vld [vmem:[%s5815_s20 + $0x50] sm:$0xff]  ;;  %v353_v28 = vld [vmem:[%s5815_s20 + $0x58] sm:$0xff]  ;;  %v355_v30 = vld [vmem:[%s5815_s20 + $0x68] sm:$0xff]  ;;  %663 = vst [vmem:[#allocation2 + $0x30] sm:$0x1] %v5563_v62  ;;  %p5482_p7 = pneg %p5481_p3 }
  0x8f   : > { %v379_v31 = vpack.c.bf16 %v353_v28, %v352_v27  ;;  %v380_v32 = vpack.c.bf16 %v355_v30, %v354_v29  ;;  %v356_v33 = vld [vmem:[%s5815_s20 + $0x70] sm:$0xff]  ;;  %v357_v34 = vld [vmem:[%s5815_s20 + $0x78] sm:$0xff]  ;;  %v358_v35 = vld [vmem:[%s5815_s20 + $0x80] sm:$0xff]  ;;  %664 = vst [vmem:[#allocation2 + $0x48] sm:$0x1] %v5563_v62 }
  0x90   : > { %4397 = vmatpush3.bf16.msra.mxu0 %v5278_v2  ;;  %v359_v36 = vld [vmem:[%s5815_s20 + $0x88] sm:$0xff]  ;;  %v381_v37 = vpack.c.bf16 %v357_v34, %v356_v33  ;;  %v360_v39 = vld [vmem:[%s5815_s20 + $0x90] sm:$0xff]  ;;  %v361_v40 = vld [vmem:[%s5815_s20 + $0x98] sm:$0xff]  ;;  %665 = vst [vmem:[#allocation2 + $0x60] sm:$0x1] %v5563_v62 }
  0x91   : > { %4398 = vmatprep.subr.bf16.mxu0 %v5279_v3  ;;  %v382_v38 = vpack.c.bf16 %v359_v36, %v358_v35  ;;  %v362_v41 = vld [vmem:[%s5815_s20 + $0xa0] sm:$0xff]  ;;  %v363_v42 = vld [vmem:[%s5815_s20 + $0xa8] sm:$0xff]  ;;  %v383_v43 = vpack.c.bf16 %v361_v40, %v360_v39  ;;  %v364_v45 = vld [vmem:[%s5815_s20 + $0xb0] sm:$0xff]  ;;  %666 = vst [vmem:[#allocation2 + $0x78] sm:$0x1] %v5563_v62 }
  0x92   : > { %v384_v44 = vpack.c.bf16 %v363_v42, %v362_v41  ;;  %v365_v46 = vld [vmem:[%s5815_s20 + $0xb8] sm:$0xff]  ;;  %v366_v47 = vld [vmem:[%s5815_s20 + $0xc0] sm:$0xff]  ;;  %v367_v48 = vld [vmem:[%s5815_s20 + $0xc8] sm:$0xff]  ;;  %667 = vst [vmem:[#allocation2 + $0x90] sm:$0x1] %v5563_v62 }
  0x93   : > { %v385_v49 = vpack.c.bf16 %v365_v46, %v364_v45  ;;  %v386_v50 = vpack.c.bf16 %v367_v48, %v366_v47  ;;  %v368_v51 = vld [vmem:[%s5815_s20 + $0xd0] sm:$0xff]  ;;  %v369_v52 = vld [vmem:[%s5815_s20 + $0xd8] sm:$0xff]  ;;  %v370_v53 = vld [vmem:[%s5815_s20 + $0xe0] sm:$0xff]  ;;  %668 = vst [vmem:[#allocation2 + $0xa8] sm:$0x1] %v5563_v62 }
  0x94   : > { %4399 = vmatpush3.bf16.msra.mxu0 %v5279_v3  ;;  %v371_v54 = vld [vmem:[%s5815_s20 + $0xe8] sm:$0xff]  ;;  %v387_v55 = vpack.c.bf16 %v369_v52, %v368_v51  ;;  %v372_v57 = vld [vmem:[%s5815_s20 + $0xf0] sm:$0xff]  ;;  %v373_v58 = vld [vmem:[%s5815_s20 + $0xf8] sm:$0xff]  ;;  %669 = vst [vmem:[#allocation2 + $0xc0] sm:$0x1] %v5563_v62 }
  0x95   : > { %4400 = vmatprep.subr.bf16.mxu0 %v5280_v7  ;;  %v388_v56 = vpack.c.bf16 %v371_v54, %v370_v53  ;;  %v389_v59 = vpack.c.bf16 %v373_v58, %v372_v57  ;;  %v5288_v60 = vld [vmem:[#allocation8 + $0x60] sm:$0xff]   ;;  %v5289_v61 = vld [vmem:[#allocation8 + $0x68] sm:$0xff]   ;;  %670 = vst [vmem:[#allocation2 + $0xd8] sm:$0x1] %v5563_v62  ;;  %671 = vst [vmem:[#allocation2 + $0xf0] sm:$0x1] %v5563_v62 }
  0x96   : > { %672 = vst [vmem:[#allocation2 + $0x108] sm:$0x1] %v5563_v62  ;;  %673 = vst [vmem:[#allocation2 + $0x120] sm:$0x1] %v5563_v62  ;;  %v5290_v63 = vld [vmem:[#allocation8 + $0x70] sm:$0xff]   ;;  %v5291_v0 = vld [vmem:[#allocation8 + $0x78] sm:$0xff]  }
  0x97   : > { %674 = vst [vmem:[#allocation2 + $0x138] sm:$0x1] %v5563_v62  ;;  %675 = vst [vmem:[#allocation2 + $0x150] sm:$0x1] %v5563_v62  ;;  %v794_v1 = vld [vmem:[#allocation2 + $0x1] sm:$0xff]  ;;  %v795_v2 = vld [vmem:[#allocation2 + $0x9] sm:$0xff] }
  0x98   : > { %4401 = vmatpush3.bf16.msra.mxu0 %v5280_v7  ;;  %676 = vst [vmem:[#allocation2 + $0x168] sm:$0x1] %v5563_v62  ;;  %677 = vst [vmem:[#allocation2 + $0x180] sm:$0x1] %v5563_v62  ;;  %v826_v3 = vpack.c.bf16 %v795_v2, %v794_v1  ;;  %v5903_v4 = vld [vmem:[#allocation8 + $0xc0] sm:$0xff]   ;;  %v5907_v5 = vld [vmem:[#allocation8 + $0xc8] sm:$0xff]  }
  0x99   : > { %4402 = vmatprep.subr.bf16.mxu0 %v5281_v8  ;;  %680 = vst [vmem:[#allocation2 + $0x29] sm:$0x1] %v5563_v62  ;;  %681 = vst [vmem:[#allocation2 + $0x41] sm:$0x1] %v5563_v62  ;;  %4920 = vmatprep.subr.bf16.mxu1 %v5903_v4  ;;  %v5911_v6 = vld [vmem:[#allocation8 + $0xd0] sm:$0xff]   ;;  %v5915_v7 = vld [vmem:[#allocation8 + $0xd8] sm:$0xff]  }
  0x9a   : > { %682 = vst [vmem:[#allocation2 + $0x59] sm:$0x1] %v5563_v62  ;;  %683 = vst [vmem:[#allocation2 + $0x71] sm:$0x1] %v5563_v62  ;;  %4928 = vmatpush3.bf16.msra.mxu1 %v5903_v4  ;;  %v5927_v11 = vld [vmem:[#allocation8 + $0xf0] sm:$0xff]   ;;  %v5931_v12 = vld [vmem:[#allocation8 + $0xf8] sm:$0xff]  }
  0x9b   : > { %684 = vst [vmem:[#allocation2 + $0x89] sm:$0x1] %v5563_v62  ;;  %685 = vst [vmem:[#allocation2 + $0xa1] sm:$0x1] %v5563_v62  ;;  %4921 = vmatprep.subr.bf16.mxu1 %v5907_v5  ;;  %v5935_v13 = vld [vmem:[#allocation8 + $0x100] sm:$0xff]   ;;  %v5302_v30 = vld [vmem:[#allocation8 + $0x8] sm:$0xff]  }
  0x9c   : > { %4403 = vmatpush3.bf16.msra.mxu0 %v5281_v8  ;;  %686 = vst [vmem:[#allocation2 + $0xb9] sm:$0x1] %v5563_v62  ;;  %687 = vst [vmem:[#allocation2 + $0xd1] sm:$0x1] %v5563_v62  ;;  %v5919_v8 = vld [vmem:[#allocation8 + $0xe0] sm:$0xff]   ;;  %v5304_v40 = vld [vmem:[#allocation8 + $0x10] sm:$0xff]  }
  0x9d   : > { %4404 = vmatprep.subr.bf16.mxu0 %v5282_v9  ;;  %688 = vst [vmem:[#allocation2 + $0xe9] sm:$0x1] %v5563_v62  ;;  %689 = vst [vmem:[#allocation2 + $0x101] sm:$0x1] %v5563_v62  ;;  %v5941_v14 = vld [vmem:[%s6456_s2] ss:$0 sm:$0xff] }
  0x9e   : > { %690 = vst [vmem:[#allocation2 + $0x119] sm:$0x1] %v5563_v62  ;;  %691 = vst [vmem:[#allocation2 + $0x131] sm:$0x1] %v5563_v62  ;;  %4929 = vmatpush3.bf16.msra.mxu1 %v5907_v5  ;;  %v5306_v46 = vld [vmem:[#allocation8 + $0x18] sm:$0xff]  }
  0x9f   : > { %692 = vst [vmem:[#allocation2 + $0x149] sm:$0x1] %v5563_v62  ;;  %693 = vst [vmem:[#allocation2 + $0x161] sm:$0x1] %v5563_v62  ;;  %4922 = vmatprep.subr.bf16.mxu1 %v5911_v6 }
  0xa0   : > { %4405 = vmatpush3.bf16.msra.mxu0 %v5282_v9  ;;  %694 = vst [vmem:[#allocation2 + $0x179] sm:$0x1] %v5563_v62  ;;  %695 = vst [vmem:[#allocation2 + $0x191] sm:$0x1] %v5563_v62  ;;  %v5923_v9 = vld [vmem:[#allocation8 + $0xe8] sm:$0xff]  }
  0xa1   : > { %4406 = vmatprep.subr.bf16.mxu0 %v5283_v10  ;;  %661 = vst [vmem:[#allocation2] sm:$0x1] %v5563_v62  ;;  %679 = vst [vmem:[#allocation2 + $0x11] sm:$0x1] %v5563_v62 }
  0xa2   : > { %678 = vst [vmem:[#allocation2 + $0x198] sm:$0x1] %v5563_v62  ;;  %696 = vst [vmem:[#allocation2 + $0x1a9] sm:$0x1] %v5563_v62  ;;  %4930 = vmatpush3.bf16.msra.mxu1 %v5911_v6 }
  0xa3   : > { %4923 = vmatprep.subr.bf16.mxu1 %v5915_v7 }
  0xa4   : > { %4407 = vmatpush3.bf16.msra.mxu0 %v5283_v10  ;;  %v5300_v10 = vld [vmem:[#allocation8] sm:$0xff]  }
  0xa5   : > { %4440 = vmatprep.subr.bf16.mxu0 %v5284_v15 }
  0xa6   : > { %4931 = vmatpush3.bf16.msra.mxu1 %v5915_v7 }
  0xa7   : > { %4409 = vmatmul.mubr.bf16.vlgmr.msra.gmra.mrb[0].mxu0 %v375_v16  ;;  %4924 = vmatprep.subr.bf16.mxu1 %v5919_v8 }
  0xa8   : > { %4412 = vmatprep.mubr.bf16.mxu0 %v376_v18  ;;  %4441 = vmatpush3.bf16.msra.mxu0 %v5284_v15 }
  0xa9   : > { %4442 = vmatprep.subr.bf16.mxu0 %v5285_v17 }
  0xaa   : > { %4932 = vmatpush3.bf16.msra.mxu1 %v5919_v8 }
  0xab   : > { %4925 = vmatprep.subr.bf16.mxu1 %v5923_v9 }
  0xac   : > { %4443 = vmatpush3.bf16.msra.mxu0 %v5285_v17 }
  0xad   : > { %4444 = vmatprep.subr.bf16.mxu0 %v5286_v23 }
  0xae   : > { %4933 = vmatpush3.bf16.msra.mxu1 %v5923_v9 }
  0xaf   : > { %4413 = vmatmul.mubr.bf16.gmra.mrb[4].mxu0 %v377_v24  ;;  %4926 = vmatprep.subr.bf16.mxu1 %v5927_v11 }
  0xb0   : > { %4416 = vmatprep.mubr.bf16.mxu0 %v378_v26  ;;  %4445 = vmatpush3.bf16.msra.mxu0 %v5286_v23 }
  0xb1   : > { %4446 = vmatprep.subr.bf16.mxu0 %v5287_v25 }
  0xb2   : > { %4934 = vmatpush3.bf16.msra.mxu1 %v5927_v11 }
  0xb3   : > { %4927 = vmatprep.subr.bf16.mxu1 %v5931_v12 }
  0xb4   : > { %4447 = vmatpush3.bf16.msra.mxu0 %v5287_v25 }
  0xb5   : > { %4448 = vmatprep.subr.bf16.mxu0 %v5288_v60 }
  0xb6   : > { %4935 = vmatpush3.bf16.msra.mxu1 %v5931_v12 }
  0xb7   : > { %4417 = vmatmul.mubr.bf16.gmra.mrb[8].mxu0 %v379_v31  ;;  %4632 = vmatprep.subr.bf16.mxu1 %v5935_v13 }
  0xb8   : > { %4420 = vmatprep.mubr.bf16.mxu0 %v380_v32  ;;  %4449 = vmatpush3.bf16.msra.mxu0 %v5288_v60 }
  0xb9   : > { %4450 = vmatprep.subr.bf16.mxu0 %v5289_v61 }
  0xbc   : > { %4451 = vmatpush3.bf16.msra.mxu0 %v5289_v61 }
  0xbd   : > { %4452 = vmatprep.subr.bf16.mxu0 %v5290_v63 }
  0xbf   : > { %4421 = vmatmul.mubr.bf16.gmra.mrb[12].mxu0 %v381_v37 }
  0xc0   : > { %4424 = vmatprep.mubr.bf16.mxu0 %v382_v38  ;;  %4453 = vmatpush3.bf16.msra.mxu0 %v5290_v63  ;;  %v5310_v63 = vld [vmem:[#allocation8 + $0x28] sm:$0xff]  }
  0xc1   : > { %4454 = vmatprep.subr.bf16.mxu0 %v5291_v0 }
  0xc4   : > { %4455 = vmatpush3.bf16.msra.mxu0 %v5291_v0 }
  0xc5   : > { %4488 = vmatprep.subr.bf16.mxu0 %v5300_v10 }
  0xc7   : > { %4425 = vmatmul.mubr.bf16.gmra.mrb[16].mxu0 %v383_v43 }
  0xc8   : > { %4428 = vmatprep.mubr.bf16.mxu0 %v384_v44 }
  0xcf   : > { %4429 = vmatmul.mubr.bf16.gmra.mrb[20].mxu0 %v385_v49 }
  0xd0   : > { %4432 = vmatprep.mubr.bf16.mxu0 %v386_v50 }
  0xd7   : > { %4433 = vmatmul.mubr.bf16.gmra.mrb[24].mxu0 %v387_v55 }
  0xd8   : > { %4436 = vmatprep.mubr.bf16.mxu0 %v388_v56  ;;  %v5308_v56 = vld [vmem:[#allocation8 + $0x20] sm:$0xff]  }
  0xdf   : > { %4437 = vmatmul.mubr.bf16.gmra.mrb[28].mxu0 %v389_v59 }
  0xe0   : > { %4456 = vmatprep.mubr.bf16.mxu0 %v826_v3 }
 0x17a   : > { %v4410_v15 = vpop.f32.mrb[0].mxu0 }
 0x17b   : > { %v504_v16 = vadd.f32 %v4410_v15, %v5941_v14  ;;  %v495_v17 = vpop.f32.mrb[1].mxu0 }
 0x17c   : > { %v496_v18 = vadd.f32 %v5941_v14, %v495_v17  ;;  %v4411_v19 = vpop.f32.mrb[2].mxu0 }
 0x17d   : > { %v624_v20 = vmax.f32 %v504_v16, 0.0  ;;  %v507_v21 = vadd.f32 %v4411_v19, %v5941_v14  ;;  %v498_v22 = vpop.f32.mrb[3].mxu0  ;;  %v5312_v19 = vld [vmem:[#allocation8 + $0x30] sm:$0xff]  }
 0x17e   : > { %v622_v23 = vmax.f32 %v496_v18, 0.0  ;;  %v499_v24 = vadd.f32 %v5941_v14, %v498_v22 }
 0x17f   : > { %700 = vst [vmem:[#allocation2 + $0x31] sm:$0xff] %v624_v20  ;;  %v625_v25 = vmax.f32 %v507_v21, 0.0 }
 0x180   : > { %698 = vst [vmem:[#allocation2 + $0x19] sm:$0xff] %v622_v23  ;;  %v623_v26 = vmax.f32 %v499_v24, 0.0 }
 0x181   : > { %701 = vst [vmem:[#allocation2 + $0x39] sm:$0xff] %v625_v25  ;;  %v5947_v27 = vpack.c.bf16 %v625_v25, %v624_v20  ;;  %v5314_v25 = vld [vmem:[#allocation8 + $0x38] sm:$0xff]  }
 0x182   : > { %699 = vst [vmem:[#allocation2 + $0x21] sm:$0xff] %v623_v26  ;;  %v4414_v28 = vpop.f32.mrb[4].mxu0  ;;  %v5949_v29 = vpack.c.bf16 %v623_v26, %v622_v23 }
 0x183   : > { %v520_v31 = vadd.f32 %v4414_v28, %v5941_v14  ;;  %v511_v32 = vpop.f32.mrb[5].mxu0 }
 0x184   : > { %v512_v33 = vadd.f32 %v5941_v14, %v511_v32  ;;  %v4415_v34 = vpop.f32.mrb[6].mxu0  ;;  %4457 = vmatmul.mubr.bf16.vlgmr.msra.gmra.mrb[32].mxu0 %v5949_v29 }
 0x185   : > { %v628_v35 = vmax.f32 %v520_v31, 0.0  ;;  %v523_v36 = vadd.f32 %v4415_v34, %v5941_v14  ;;  %v514_v37 = vpop.f32.mrb[7].mxu0  ;;  %4460 = vmatprep.mubr.bf16.mxu0 %v5947_v27  ;;  %4489 = vmatpush3.bf16.msra.mxu0 %v5300_v10 }
 0x186   : > { %v626_v38 = vmax.f32 %v512_v33, 0.0  ;;  %v515_v39 = vadd.f32 %v5941_v14, %v514_v37  ;;  %4490 = vmatprep.subr.bf16.mxu0 %v5302_v30  ;;  %v5987_v37 = vld [vmem:[#allocation8 + $0x80] sm:$0xff]  }
 0x187   : > { %704 = vst [vmem:[#allocation2 + $0x61] sm:$0xff] %v628_v35  ;;  %v629_v41 = vmax.f32 %v523_v36, 0.0 }
 0x188   : > { %702 = vst [vmem:[#allocation2 + $0x49] sm:$0xff] %v626_v38  ;;  %v627_v42 = vmax.f32 %v515_v39, 0.0 }
 0x189   : > { %705 = vst [vmem:[#allocation2 + $0x69] sm:$0xff] %v629_v41  ;;  %v5957_v43 = vpack.c.bf16 %v629_v41, %v628_v35  ;;  %4491 = vmatpush3.bf16.msra.mxu0 %v5302_v30 }
 0x18a   : > { %703 = vst [vmem:[#allocation2 + $0x51] sm:$0xff] %v627_v42  ;;  %v4418_v44 = vpop.f32.mrb[8].mxu0  ;;  %v5959_v45 = vpack.c.bf16 %v627_v42, %v626_v38  ;;  %4492 = vmatprep.subr.bf16.mxu0 %v5304_v40 }
 0x18b   : > { %v536_v47 = vadd.f32 %v4418_v44, %v5941_v14  ;;  %v527_v48 = vpop.f32.mrb[9].mxu0 }
 0x18c   : > { %v528_v49 = vadd.f32 %v5941_v14, %v527_v48  ;;  %v4419_v50 = vpop.f32.mrb[10].mxu0  ;;  %4461 = vmatmul.mubr.bf16.gmra.mrb[36].mxu0 %v5959_v45 }
 0x18d   : > { %v632_v51 = vmax.f32 %v536_v47, 0.0  ;;  %v539_v52 = vadd.f32 %v4419_v50, %v5941_v14  ;;  %v530_v53 = vpop.f32.mrb[11].mxu0  ;;  %4464 = vmatprep.mubr.bf16.mxu0 %v5957_v43  ;;  %4493 = vmatpush3.bf16.msra.mxu0 %v5304_v40 }
 0x18e   : > { %v630_v54 = vmax.f32 %v528_v49, 0.0  ;;  %v531_v55 = vadd.f32 %v5941_v14, %v530_v53  ;;  %4494 = vmatprep.subr.bf16.mxu0 %v5306_v46 }
 0x18f   : > { %708 = vst [vmem:[#allocation2 + $0x91] sm:$0xff] %v632_v51  ;;  %v633_v57 = vmax.f32 %v539_v52, 0.0 }
 0x190   : > { %706 = vst [vmem:[#allocation2 + $0x79] sm:$0xff] %v630_v54  ;;  %v631_v58 = vmax.f32 %v531_v55, 0.0 }
 0x191   : > { %709 = vst [vmem:[#allocation2 + $0x99] sm:$0xff] %v633_v57  ;;  %v5967_v59 = vpack.c.bf16 %v633_v57, %v632_v51  ;;  %4495 = vmatpush3.bf16.msra.mxu0 %v5306_v46 }
 0x192   : > { %707 = vst [vmem:[#allocation2 + $0x81] sm:$0xff] %v631_v58  ;;  %v4422_v60 = vpop.f32.mrb[12].mxu0  ;;  %v5969_v61 = vpack.c.bf16 %v631_v58, %v630_v54  ;;  %4496 = vmatprep.subr.bf16.mxu0 %v5308_v56 }
 0x193   : > { %v552_v0 = vadd.f32 %v4422_v60, %v5941_v14  ;;  %v543_v1 = vpop.f32.mrb[13].mxu0 }
 0x194   : > { %v544_v2 = vadd.f32 %v5941_v14, %v543_v1  ;;  %v4423_v3 = vpop.f32.mrb[14].mxu0  ;;  %4465 = vmatmul.mubr.bf16.gmra.mrb[40].mxu0 %v5969_v61 }
 0x195   : > { %v636_v10 = vmax.f32 %v552_v0, 0.0  ;;  %v555_v15 = vadd.f32 %v4423_v3, %v5941_v14  ;;  %v546_v16 = vpop.f32.mrb[15].mxu0  ;;  %4468 = vmatprep.mubr.bf16.mxu0 %v5967_v59  ;;  %4497 = vmatpush3.bf16.msra.mxu0 %v5308_v56 }
 0x196   : > { %v634_v17 = vmax.f32 %v544_v2, 0.0  ;;  %v547_v18 = vadd.f32 %v5941_v14, %v546_v16  ;;  %4498 = vmatprep.subr.bf16.mxu0 %v5310_v63  ;;  %v5303_v16 = vld [vmem:[#allocation8 + $0x108] sm:$0xff]  }
 0x197   : > { %712 = vst [vmem:[#allocation2 + $0xc1] sm:$0xff] %v636_v10  ;;  %v637_v20 = vmax.f32 %v555_v15, 0.0 }
 0x198   : > { %710 = vst [vmem:[#allocation2 + $0xa9] sm:$0xff] %v634_v17  ;;  %v635_v21 = vmax.f32 %v547_v18, 0.0 }
 0x199   : > { %713 = vst [vmem:[#allocation2 + $0xc9] sm:$0xff] %v637_v20  ;;  %v5977_v22 = vpack.c.bf16 %v637_v20, %v636_v10  ;;  %4499 = vmatpush3.bf16.msra.mxu0 %v5310_v63 }
 0x19a   : > { %711 = vst [vmem:[#allocation2 + $0xb1] sm:$0xff] %v635_v21  ;;  %v4426_v23 = vpop.f32.mrb[16].mxu0  ;;  %v5979_v24 = vpack.c.bf16 %v635_v21, %v634_v17  ;;  %4500 = vmatprep.subr.bf16.mxu0 %v5312_v19 }
 0x19b   : > { %v568_v26 = vadd.f32 %v4426_v23, %v5941_v14  ;;  %v559_v28 = vpop.f32.mrb[17].mxu0 }
 0x19c   : > { %v560_v30 = vadd.f32 %v5941_v14, %v559_v28  ;;  %v4427_v31 = vpop.f32.mrb[18].mxu0  ;;  %4469 = vmatmul.mubr.bf16.gmra.mrb[44].mxu0 %v5979_v24  ;;  %v5305_v28 = vld [vmem:[#allocation8 + $0x110] sm:$0xff]  }
 0x19d   : > { %v640_v32 = vmax.f32 %v568_v26, 0.0  ;;  %v571_v33 = vadd.f32 %v4427_v31, %v5941_v14  ;;  %v562_v34 = vpop.f32.mrb[19].mxu0  ;;  %4472 = vmatprep.mubr.bf16.mxu0 %v5977_v22  ;;  %4501 = vmatpush3.bf16.msra.mxu0 %v5312_v19 }
 0x19e   : > { %v638_v35 = vmax.f32 %v560_v30, 0.0  ;;  %v563_v36 = vadd.f32 %v5941_v14, %v562_v34  ;;  %4502 = vmatprep.subr.bf16.mxu0 %v5314_v25 }
 0x19f   : > { %716 = vst [vmem:[#allocation2 + $0xf1] sm:$0xff] %v640_v32  ;;  %v641_v38 = vmax.f32 %v571_v33, 0.0 }
 0x1a0   : > { %714 = vst [vmem:[#allocation2 + $0xd9] sm:$0xff] %v638_v35  ;;  %v639_v39 = vmax.f32 %v563_v36, 0.0 }
 0x1a1   : > { %717 = vst [vmem:[#allocation2 + $0xf9] sm:$0xff] %v641_v38  ;;  %v5989_v40 = vpack.c.bf16 %v641_v38, %v640_v32  ;;  %4503 = vmatpush3.bf16.msra.mxu0 %v5314_v25 }
 0x1a2   : > { %715 = vst [vmem:[#allocation2 + $0xe1] sm:$0xff] %v639_v39  ;;  %v4430_v41 = vpop.f32.mrb[20].mxu0  ;;  %v5991_v42 = vpack.c.bf16 %v639_v39, %v638_v35  ;;  %4536 = vmatprep.subr.bf16.mxu0 %v5987_v37 }
 0x1a3   : > { %v584_v44 = vadd.f32 %v4430_v41, %v5941_v14  ;;  %v575_v46 = vpop.f32.mrb[21].mxu0 }
 0x1a4   : > { %v576_v47 = vadd.f32 %v5941_v14, %v575_v46  ;;  %v4431_v48 = vpop.f32.mrb[22].mxu0  ;;  %4473 = vmatmul.mubr.bf16.gmra.mrb[48].mxu0 %v5991_v42  ;;  %v5307_v46 = vld [vmem:[#allocation8 + $0x118] sm:$0xff]  }
 0x1a5   : > { %v644_v49 = vmax.f32 %v584_v44, 0.0  ;;  %v587_v50 = vadd.f32 %v4431_v48, %v5941_v14  ;;  %v578_v51 = vpop.f32.mrb[23].mxu0  ;;  %4476 = vmatprep.mubr.bf16.mxu0 %v5989_v40 }
 0x1a6   : > { %v642_v52 = vmax.f32 %v576_v47, 0.0  ;;  %v579_v53 = vadd.f32 %v5941_v14, %v578_v51  ;;  %v1601_v1 = vld [vmem:[#allocation2 + $0xf0] sm:$0xff] }
 0x1a7   : > { %720 = vst [vmem:[#allocation2 + $0x121] sm:$0xff] %v644_v49  ;;  %v645_v54 = vmax.f32 %v587_v50, 0.0  ;;  %v1599_v57 = vld [vmem:[#allocation2 + $0xd8] sm:$0xff] }
 0x1a8   : > { %718 = vst [vmem:[#allocation2 + $0x109] sm:$0xff] %v642_v52  ;;  %v643_v55 = vmax.f32 %v579_v53, 0.0  ;;  %v1602_v56 = vld [vmem:[#allocation2 + $0xf8] sm:$0xff] }
 0x1a9   : > { %721 = vst [vmem:[#allocation2 + $0x129] sm:$0xff] %v645_v54  ;;  %v1600_v58 = vld [vmem:[#allocation2 + $0xe0] sm:$0xff]  ;;  %v6000_v60 = vpack.c.bf16 %v645_v54, %v644_v49  ;;  %v6007_v15 = vpack.c.bf16 %v1602_v56, %v1601_v1  ;;  %v5309_v56 = vld [vmem:[#allocation8 + $0x120] sm:$0xff]  }
 0x1aa   : > { %719 = vst [vmem:[#allocation2 + $0x111] sm:$0xff] %v643_v55  ;;  %v4434_v63 = vpop.f32.mrb[24].mxu0  ;;  %v6002_v0 = vpack.c.bf16 %v1600_v58, %v1599_v57  ;;  %v6004_v2 = vpack.c.bf16 %v643_v55, %v642_v52  ;;  %v730_v54 = vld [vmem:[#allocation2] sm:$0xff] }
 0x1ab   : > { %v600_v3 = vadd.f32 %v4434_v63, %v5941_v14  ;;  %v591_v10 = vpop.f32.mrb[25].mxu0 }
 0x1ac   : > { %v592_v17 = vadd.f32 %v5941_v14, %v591_v10  ;;  %v4435_v18 = vpop.f32.mrb[26].mxu0  ;;  %4616 = vmatprep.mubr.bf16.mxu1 %v6002_v0  ;;  %4477 = vmatmul.mubr.bf16.gmra.mrb[52].mxu0 %v6004_v2 }
 0x1ad   : > { %v648_v19 = vmax.f32 %v600_v3, 0.0  ;;  %v603_v20 = vadd.f32 %v4435_v18, %v5941_v14  ;;  %v594_v21 = vpop.f32.mrb[27].mxu0  ;;  %4617 = vmatmul.mubr.bf16.vlgmr.msra.gmra.mrb[0].mxu1 %v6007_v15  ;;  %4480 = vmatprep.mubr.bf16.mxu0 %v6000_v60  ;;  %v762_v3 = vpack.c.bf16 %v5563_v62, %v730_v54  ;;  %v5313_v62 = vld [vmem:[#allocation8 + $0x130] sm:$0xff]  }
 0x1ae   : > { %v646_v23 = vmax.f32 %v592_v17, 0.0  ;;  %v595_v25 = vadd.f32 %v5941_v14, %v594_v21  ;;  %4633 = vmatpush3.bf16.msra.mxu1 %v5935_v13  ;;  %v1605_v38 = vld [vmem:[#allocation2 + $0x120] sm:$0xff] }
 0x1af   : > { %724 = vst [vmem:[#allocation2 + $0x151] sm:$0xff] %v648_v19  ;;  %v649_v26 = vmax.f32 %v603_v20, 0.0  ;;  %4634 = vmatprep.subr.bf16.mxu1 %v5303_v16  ;;  %v1603_v32 = vld [vmem:[#allocation2 + $0x108] sm:$0xff]  ;;  %v733_v20 = vld [vmem:[#allocation2 + $0x20] sm:$0xff] }
 0x1b0   : > { %722 = vst [vmem:[#allocation2 + $0x139] sm:$0xff] %v646_v23  ;;  %v647_v30 = vmax.f32 %v595_v25, 0.0  ;;  %v1606_v31 = vld [vmem:[#allocation2 + $0x128] sm:$0xff] }
 0x1b1   : > { %725 = vst [vmem:[#allocation2 + $0x159] sm:$0xff] %v649_v26  ;;  %v1604_v33 = vld [vmem:[#allocation2 + $0x110] sm:$0xff]  ;;  %v6017_v34 = vpack.c.bf16 %v649_v26, %v648_v19  ;;  %v6024_v44 = vpack.c.bf16 %v1606_v31, %v1605_v38  ;;  %v5311_v19 = vld [vmem:[#allocation8 + $0x128] sm:$0xff]   ;;  %v5315_v38 = vld [vmem:[#allocation8 + $0x138] sm:$0xff]  }
 0x1b2   : > { %723 = vst [vmem:[#allocation2 + $0x141] sm:$0xff] %v647_v30  ;;  %4635 = vmatpush3.bf16.msra.mxu1 %v5303_v16  ;;  %v4438_v35 = vpop.f32.mrb[28].mxu0  ;;  %v6019_v36 = vpack.c.bf16 %v1604_v33, %v1603_v32  ;;  %v6021_v39 = vpack.c.bf16 %v647_v30, %v646_v23  ;;  %v735_v23 = vld [vmem:[#allocation2 + $0x38] sm:$0xff]  ;;  %v734_v33 = vld [vmem:[#allocation2 + $0x30] sm:$0xff] }
 0x1b3   : > { %v616_v13 = vadd.f32 %v4438_v35, %v5941_v14  ;;  %v607_v41 = vpop.f32.mrb[29].mxu0  ;;  %4636 = vmatprep.subr.bf16.mxu1 %v5305_v28 }
 0x1b4   : > { %v608_v47 = vadd.f32 %v5941_v14, %v607_v41  ;;  %v4439_v48 = vpop.f32.mrb[30].mxu0  ;;  %4620 = vmatprep.mubr.bf16.mxu1 %v6019_v36  ;;  %4481 = vmatmul.mubr.bf16.gmra.mrb[56].mxu0 %v6021_v39  ;;  %v5322_v41 = vld [vmem:[#allocation8 + $0x88] sm:$0xff]  }
 0x1b5   : > { %v652_v49 = vmax.f32 %v616_v13, 0.0  ;;  %v619_v50 = vadd.f32 %v4439_v48, %v5941_v14  ;;  %v610_v51 = vpop.f32.mrb[31].mxu0  ;;  %4621 = vmatmul.mubr.bf16.gmra.mrb[4].mxu1 %v6024_v44  ;;  %4484 = vmatprep.mubr.bf16.mxu0 %v6017_v34  ;;  %v6049_v13 = vpack.c.bf16 %v735_v23, %v734_v33  ;;  %v739_v48 = vld [vmem:[#allocation2 + $0x68] sm:$0xff]  ;;  %v5334_v33 = vld [vmem:[#allocation8 + $0x190] sm:$0xff]  }
 0x1b6   : > { %v650_v52 = vmax.f32 %v608_v47, 0.0  ;;  %v611_v53 = vadd.f32 %v5941_v14, %v610_v51  ;;  %4637 = vmatpush3.bf16.msra.mxu1 %v5305_v28  ;;  %v1609_v14 = vld [vmem:[#allocation2 + $0x150] sm:$0xff]  ;;  %v732_v28 = vld [vmem:[#allocation2 + $0x18] sm:$0xff] }
 0x1b7   : > { %728 = vst [vmem:[#allocation2 + $0x181] sm:$0xff] %v652_v49  ;;  %v653_v55 = vmax.f32 %v619_v50, 0.0  ;;  %4638 = vmatprep.subr.bf16.mxu1 %v5307_v46  ;;  %v1607_v63 = vld [vmem:[#allocation2 + $0x138] sm:$0xff]  ;;  %v6047_v32 = vpack.c.bf16 %v733_v20, %v732_v28  ;;  %v737_v47 = vld [vmem:[#allocation2 + $0x50] sm:$0xff]  ;;  %v736_v50 = vld [vmem:[#allocation2 + $0x48] sm:$0xff] }
 0x1b8   : > { %726 = vst [vmem:[#allocation2 + $0x169] sm:$0xff] %v650_v52  ;;  %v651_v57 = vmax.f32 %v611_v53, 0.0  ;;  %v1610_v58 = vld [vmem:[#allocation2 + $0x158] sm:$0xff]  ;;  %v6056_v51 = vpack.c.bf16 %v737_v47, %v736_v50  ;;  %v5329_v20 = vld [vmem:[#allocation8 + $0xb0] sm:$0xff]   ;;  %v1294_v50 = vld [vmem:[#allocation2 + $0xca] sm:$0xff] }
 0x1b9   : > { %729 = vst [vmem:[#allocation2 + $0x189] sm:$0xff] %v653_v55  ;;  %v1608_v1 = vld [vmem:[#allocation2 + $0x140] sm:$0xff]  ;;  %v6034_v10 = vpack.c.bf16 %v653_v55, %v652_v49  ;;  %v6040_v18 = vpack.c.bf16 %v1610_v58, %v1609_v14  ;;  %v5317_v53 = vld [vmem:[#allocation8 + $0x148] sm:$0xff]   ;;  %v745_v14 = vld [vmem:[#allocation2 + $0xb0] sm:$0xff] }
 0x1ba   : > { %727 = vst [vmem:[#allocation2 + $0x171] sm:$0xff] %v651_v57  ;;  %4639 = vmatpush3.bf16.msra.mxu1 %v5307_v46  ;;  %v6036_v16 = vpack.c.bf16 %v1608_v1, %v1607_v63  ;;  %v6038_v17 = vpack.c.bf16 %v651_v57, %v650_v52  ;;  %v5316_v46 = vld [vmem:[#allocation8 + $0x140] sm:$0xff]   ;;  %v5323_v49 = vld [vmem:[#allocation8 + $0x90] sm:$0xff]   ;;  %v740_v58 = vld [vmem:[#allocation2 + $0x78] sm:$0xff] }
 0x1bb   : > { %4640 = vmatprep.subr.bf16.mxu1 %v5309_v56  ;;  %v738_v52 = vld [vmem:[#allocation2 + $0x60] sm:$0xff]  ;;  %v5326_v57 = vld [vmem:[#allocation8 + $0xa0] sm:$0xff]  }
 0x1bc   : > { %4624 = vmatprep.mubr.bf16.mxu1 %v6036_v16  ;;  %4485 = vmatmul.mubr.bf16.gmra.mrb[60].mxu0 %v6038_v17  ;;  %v6058_v54 = vpack.c.bf16 %v739_v48, %v738_v52  ;;  %v5318_v55 = vld [vmem:[#allocation8 + $0x150] sm:$0xff]   ;;  %v742_v1 = vld [vmem:[#allocation2 + $0x90] sm:$0xff] }
 0x1bd   : > { %4625 = vmatmul.mubr.bf16.gmra.mrb[8].mxu1 %v6040_v18  ;;  %4504 = vmatprep.mubr.bf16.mxu0 %v762_v3  ;;  %v5327_v28 = vld [vmem:[#allocation8 + $0x170] sm:$0xff]   ;;  %v2208_v47 = vld [vmem:[#allocation2 + $0xb2] sm:$0xff] }
 0x1be   : > { %4641 = vmatpush3.bf16.msra.mxu1 %v5309_v56  ;;  %v1613_v31 = vld [vmem:[#allocation2 + $0x180] sm:$0xff]  ;;  %v743_v56 = vld [vmem:[#allocation2 + $0x98] sm:$0xff]  ;;  %v5336_v48 = vld [vmem:[#allocation8 + $0x1a0] sm:$0xff]  }
 0x1bf   : > { %4642 = vmatprep.subr.bf16.mxu1 %v5311_v19  ;;  %v1611_v25 = vld [vmem:[#allocation2 + $0x168] sm:$0xff]  ;;  %v6066_v3 = vpack.c.bf16 %v743_v56, %v742_v1  ;;  %v1298_v56 = vld [vmem:[#allocation2 + $0xfa] sm:$0xff]  ;;  %v2216_v1 = vld [vmem:[#allocation2 + $0x112] sm:$0xff] }
 0x1c0   : > { %v1614_v21 = vld [vmem:[#allocation2 + $0x188] sm:$0xff] }
 0x1c1   : > { %v1612_v26 = vld [vmem:[#allocation2 + $0x170] sm:$0xff]  ;;  %v1630_v35 = vpack.c.bf16 %v1614_v21, %v1613_v31  ;;  %v744_v21 = vld [vmem:[#allocation2 + $0xa8] sm:$0xff] }
 0x1c2   : > { %4643 = vmatpush3.bf16.msra.mxu1 %v5311_v19  ;;  %v6045_v30 = vpack.c.bf16 %v1612_v26, %v1611_v25  ;;  %v5321_v19 = vld [vmem:[#allocation8 + $0x160] sm:$0xff]   ;;  %v6072_v23 = vpack.c.bf16 %v745_v14, %v744_v21  ;;  %v746_v25 = vld [vmem:[#allocation2 + $0xc0] sm:$0xff]  ;;  %v5330_v31 = vld [vmem:[#allocation8 + $0x178] sm:$0xff]  }
 0x1c3   : > { %4644 = vmatprep.subr.bf16.mxu1 %v5313_v62  ;;  %v1302_v14 = vld [vmem:[#allocation2 + $0x12a] sm:$0xff]  ;;  %v1305_v21 = vld [vmem:[#allocation2 + $0x152] sm:$0xff] }
 0x1c4   : > { %4628 = vmatprep.mubr.bf16.mxu1 %v6045_v30  ;;  %4505 = vmatmul.mubr.bf16.vlgmr.msra.gmra.mrb[32].mxu0 %v6047_v32 }
 0x1c5   : > { %4629 = vmatmul.mubr.bf16.gmra.mrb[12].mxu1 %v1630_v35  ;;  %4508 = vmatprep.mubr.bf16.mxu0 %v6049_v13  ;;  %v1290_v35 = vld [vmem:[#allocation2 + $0x9a] sm:$0xff] }
 0x1c6   : > { %4645 = vmatpush3.bf16.msra.mxu1 %v5313_v62  ;;  %4648 = vmatprep.mubr.bf16.mxu1 %v5949_v29  ;;  %v5325_v29 = vld [vmem:[#allocation8 + $0x98] sm:$0xff]  }
 0x1c7   : > { %4646 = vmatprep.subr.bf16.mxu1 %v5315_v38  ;;  %4537 = vmatpush3.bf16.msra.mxu0 %v5987_v37  ;;  %v741_v37 = vld [vmem:[#allocation2 + $0x80] sm:$0xff]  ;;  %v747_v62 = vld [vmem:[#allocation2 + $0xc8] sm:$0xff] }
 0x1c8   : > { %4538 = vmatprep.subr.bf16.mxu0 %v5322_v41  ;;  %v6064_v63 = vpack.c.bf16 %v741_v37, %v740_v58  ;;  %v6074_v26 = vpack.c.bf16 %v747_v62, %v746_v25  ;;  %v5338_v37 = vld [vmem:[#allocation8 + $0x1b0] sm:$0xff]   ;;  %v5339_v58 = vld [vmem:[#allocation8 + $0x1b8] sm:$0xff]  }
 0x1c9   : > { %v1306_v25 = vld [vmem:[#allocation2 + $0x15a] sm:$0xff] }
 0x1ca   : > { %4647 = vmatpush3.bf16.msra.mxu1 %v5315_v38 }
 0x1cb   : > { %4680 = vmatprep.subr.bf16.mxu1 %v5316_v46  ;;  %4539 = vmatpush3.bf16.msra.mxu0 %v5322_v41 }
 0x1cc   : > { %4509 = vmatmul.mubr.bf16.gmra.mrb[36].mxu0 %v6056_v51  ;;  %4540 = vmatprep.subr.bf16.mxu0 %v5323_v49 }
 0x1cd   : > { %4649 = vmatmul.mubr.bf16.vlgmr.msra.gmra.mrb[16].mxu1 %v5947_v27  ;;  %4512 = vmatprep.mubr.bf16.mxu0 %v6058_v54  ;;  %v5319_v27 = vld [vmem:[#allocation8 + $0x158] sm:$0xff]  }
 0x1ce   : > { %4681 = vmatpush3.bf16.msra.mxu1 %v5316_v46  ;;  %4652 = vmatprep.mubr.bf16.mxu1 %v5959_v45  ;;  %v5328_v45 = vld [vmem:[#allocation8 + $0xa8] sm:$0xff]   ;;  %v5335_v46 = vld [vmem:[#allocation8 + $0x198] sm:$0xff]  }
 0x1cf   : > { %4682 = vmatprep.subr.bf16.mxu1 %v5317_v53  ;;  %4541 = vmatpush3.bf16.msra.mxu0 %v5323_v49  ;;  %v1293_v49 = vld [vmem:[#allocation2 + $0xc2] sm:$0xff] }
 0x1d0   : > { %4542 = vmatprep.subr.bf16.mxu0 %v5325_v29  ;;  %v6128_v52 = vpack.c.bf16 %v1294_v50, %v1293_v49  ;;  %v2531_v49 = vld [vmem:[#allocation2 + $0x188] sm:$0xff] }
 0x1d1   : > { %v2528_v50 = vld [vmem:[#allocation2 + $0x168] sm:$0xff] }
 0x1d2   : > { %4683 = vmatpush3.bf16.msra.mxu1 %v5317_v53  ;;  %v5337_v53 = vld [vmem:[#allocation8 + $0x1a8] sm:$0xff]  }
 0x1d3   : > { %4684 = vmatprep.subr.bf16.mxu1 %v5318_v55  ;;  %4543 = vmatpush3.bf16.msra.mxu0 %v5325_v29  ;;  %v2212_v29 = vld [vmem:[#allocation2 + $0xe2] sm:$0xff] }
 0x1d4   : > { %4513 = vmatmul.mubr.bf16.gmra.mrb[40].mxu0 %v6064_v63  ;;  %4544 = vmatprep.subr.bf16.mxu0 %v5326_v57 }
 0x1d5   : > { %4653 = vmatmul.mubr.bf16.gmra.mrb[20].mxu1 %v5957_v43  ;;  %4516 = vmatprep.mubr.bf16.mxu0 %v6066_v3  ;;  %v5324_v43 = vld [vmem:[#allocation8 + $0x168] sm:$0xff]  }
 0x1d6   : > { %4656 = vmatprep.mubr.bf16.mxu1 %v5969_v61  ;;  %4685 = vmatpush3.bf16.msra.mxu1 %v5318_v55  ;;  %v5331_v61 = vld [vmem:[#allocation8 + $0xb8] sm:$0xff]   ;;  %v1297_v55 = vld [vmem:[#allocation2 + $0xf2] sm:$0xff] }
 0x1d7   : > { %4686 = vmatprep.subr.bf16.mxu1 %v5319_v27  ;;  %4545 = vmatpush3.bf16.msra.mxu0 %v5326_v57  ;;  %v6140_v57 = vpack.c.bf16 %v1298_v56, %v1297_v55  ;;  %v5364_v55 = vld [vmem:[#allocation2 + $0x8] sm:$0xff] }
 0x1d8   : > { %4546 = vmatprep.subr.bf16.mxu0 %v5328_v45 }
 0x1da   : > { %4687 = vmatpush3.bf16.msra.mxu1 %v5319_v27  ;;  %v5340_v27 = vld [vmem:[#allocation8 + $0x1c0] sm:$0xff]  }
 0x1db   : > { %4688 = vmatprep.subr.bf16.mxu1 %v5321_v19  ;;  %4547 = vmatpush3.bf16.msra.mxu0 %v5328_v45  ;;  %v1301_v45 = vld [vmem:[#allocation2 + $0x122] sm:$0xff] }
 0x1dc   : > { %4517 = vmatmul.mubr.bf16.gmra.mrb[44].mxu0 %v6072_v23  ;;  %4548 = vmatprep.subr.bf16.mxu0 %v5329_v20  ;;  %v6149_v62 = vpack.c.bf16 %v1302_v14, %v1301_v45  ;;  %v2813_v45 = vld [vmem:[#allocation2 + $0x69] sm:$0xff] }
 0x1dd   : > { %4657 = vmatmul.mubr.bf16.gmra.mrb[24].mxu1 %v5967_v59  ;;  %4520 = vmatprep.mubr.bf16.mxu0 %v6074_v26  ;;  %v5332_v59 = vld [vmem:[#allocation8 + $0x180] sm:$0xff]  }
 0x1de   : > { %4660 = vmatprep.mubr.bf16.mxu1 %v5979_v24  ;;  %4689 = vmatpush3.bf16.msra.mxu1 %v5321_v19  ;;  %v1278_v24 = vld [vmem:[#allocation2 + $0xa] sm:$0xff] }
 0x1df   : > { %4690 = vmatprep.subr.bf16.mxu1 %v5324_v43  ;;  %4549 = vmatpush3.bf16.msra.mxu0 %v5329_v20  ;;  %v2220_v20 = vld [vmem:[#allocation2 + $0x142] sm:$0xff] }
 0x1e0   : > { %4550 = vmatprep.subr.bf16.mxu0 %v5331_v61  ;;  %v2810_v14 = vld [vmem:[#allocation2 + $0x49] sm:$0xff] }
 0x1e2   : > { %4691 = vmatpush3.bf16.msra.mxu1 %v5324_v43 }
 0x1e3   : > { %4692 = vmatprep.subr.bf16.mxu1 %v5327_v28  ;;  %4551 = vmatpush3.bf16.msra.mxu0 %v5331_v61  ;;  %v6157_v61 = vpack.c.bf16 %v1306_v25, %v1305_v21  ;;  %v5349_v21 = vld [vmem:[#allocation8 + $0x208] sm:$0xff]  }
 0x1e4   : > { %4521 = vmatmul.mubr.bf16.gmra.mrb[48].mxu0 %v6002_v0  ;;  %4584 = vmatprep.subr.bf16.mxu0 %v5903_v4  ;;  %v2196_v0 = vld [vmem:[#allocation2 + $0x22] sm:$0xff] }
 0x1e5   : > { %4661 = vmatmul.mubr.bf16.gmra.mrb[28].mxu1 %v5977_v22  ;;  %4524 = vmatprep.mubr.bf16.mxu0 %v6007_v15  ;;  %v1277_v22 = vld [vmem:[#allocation2 + $0x2] sm:$0xff]  ;;  %v1282_v15 = vld [vmem:[#allocation2 + $0x3a] sm:$0xff] }
 0x1e6   : > { %4664 = vmatprep.mubr.bf16.mxu1 %v5991_v42  ;;  %4693 = vmatpush3.bf16.msra.mxu1 %v5327_v28  ;;  %v1309_v42 = vpack.c.bf16 %v1278_v24, %v1277_v22  ;;  %v2223_v28 = vld [vmem:[#allocation2 + $0x16a] sm:$0xff]  ;;  %v2225_v22 = vld [vmem:[#allocation2 + $0x182] sm:$0xff] }
 0x1e7   : > { %4694 = vmatprep.subr.bf16.mxu1 %v5330_v31  ;;  %v2226_v24 = vld [vmem:[#allocation2 + $0x18a] sm:$0xff] }
 0x1ea   : > { %4695 = vmatpush3.bf16.msra.mxu1 %v5330_v31  ;;  %v2224_v31 = vld [vmem:[#allocation2 + $0x172] sm:$0xff] }
 0x1eb   : > { %4728 = vmatprep.subr.bf16.mxu1 %v5332_v59 }
 0x1ec   : > { %4525 = vmatmul.mubr.bf16.gmra.mrb[52].mxu0 %v6019_v36 }
 0x1ed   : > { %4665 = vmatmul.mubr.bf16.gmra.mrb[0].mxu1 %v5989_v40  ;;  %4528 = vmatprep.mubr.bf16.mxu0 %v6024_v44  ;;  %v2195_v40 = vld [vmem:[#allocation2 + $0x1a] sm:$0xff]  ;;  %v1285_v44 = vld [vmem:[#allocation2 + $0x62] sm:$0xff] }
 0x1ee   : > { %4668 = vmatprep.mubr.bf16.mxu1 %v6004_v2  ;;  %v1281_v2 = vld [vmem:[#allocation2 + $0x32] sm:$0xff]  ;;  %v2227_v36 = vpack.c.bf16 %v2196_v0, %v2195_v40  ;;  %v5343_v0 = vld [vmem:[#allocation8 + $0x1d8] sm:$0xff]  }
 0x1ef   : > { %v5341_v40 = vld [vmem:[#allocation8 + $0x1c8] sm:$0xff]  }
 0x1f4   : > { %4529 = vmatmul.mubr.bf16.gmra.mrb[56].mxu0 %v6036_v16  ;;  %v1286_v16 = vld [vmem:[#allocation2 + $0x6a] sm:$0xff] }
 0x1f5   : > { %4669 = vmatmul.mubr.bf16.gmra.mrb[4].mxu1 %v6000_v60  ;;  %4532 = vmatprep.mubr.bf16.mxu0 %v6040_v18  ;;  %v6096_v60 = vpack.c.bf16 %v1282_v15, %v1281_v2  ;;  %v5333_v18 = vld [vmem:[#allocation8 + $0x188] sm:$0xff]  }
 0x1f6   : > { %4672 = vmatprep.mubr.bf16.mxu1 %v6021_v39  ;;  %v2199_v39 = vld [vmem:[#allocation2 + $0x4a] sm:$0xff]  ;;  %v2519_v2 = vld [vmem:[#allocation2 + $0xf8] sm:$0xff] }
 0x1f7   : > { %v2516_v15 = vld [vmem:[#allocation2 + $0xd8] sm:$0xff] }
 0x1fc   : > { %4533 = vmatmul.mubr.bf16.gmra.mrb[60].mxu0 %v6045_v30  ;;  %v6105_v30 = vpack.c.bf16 %v1286_v16, %v1285_v44  ;;  %v5348_v44 = vld [vmem:[#allocation8 + $0x200] sm:$0xff]   ;;  %v2523_v16 = vld [vmem:[#allocation2 + $0x128] sm:$0xff] }
 0x1fd   : > { %4673 = vmatmul.mubr.bf16.gmra.mrb[8].mxu1 %v6017_v34  ;;  %4552 = vmatprep.mubr.bf16.mxu0 %v1309_v42  ;;  %v2200_v34 = vld [vmem:[#allocation2 + $0x52] sm:$0xff]  ;;  %v6169_v42 = vpack.c.bf16 %v2226_v24, %v2225_v22 }
 0x1fe   : > { %4676 = vmatprep.mubr.bf16.mxu1 %v6038_v17  ;;  %v6102_v17 = vpack.c.bf16 %v2200_v34, %v2199_v39  ;;  %v5347_v39 = vld [vmem:[#allocation8 + $0x1f8] sm:$0xff]   ;;  %v2817_v22 = vld [vmem:[#allocation2 + $0x99] sm:$0xff] }
 0x1ff   : > { %v2814_v24 = vld [vmem:[#allocation2 + $0x79] sm:$0xff] }
 0x204   : > { %4553 = vmatmul.mubr.bf16.vlgmr.msra.gmra.mrb[32].mxu0 %v2227_v36 }
 0x205   : > { %4677 = vmatmul.mubr.bf16.gmra.mrb[12].mxu1 %v6034_v10  ;;  %4556 = vmatprep.mubr.bf16.mxu0 %v6096_v60  ;;  %v2204_v10 = vld [vmem:[#allocation2 + $0x82] sm:$0xff] }
 0x206   : > { %4696 = vmatprep.mubr.bf16.mxu1 %v2227_v36  ;;  %4585 = vmatpush3.bf16.msra.mxu0 %v5903_v4  ;;  %v2203_v4 = vld [vmem:[#allocation2 + $0x7a] sm:$0xff]  ;;  %v2518_v36 = vld [vmem:[#allocation2 + $0xf0] sm:$0xff] }
 0x207   : > { %4586 = vmatprep.subr.bf16.mxu0 %v5907_v5  ;;  %v6114_v38 = vpack.c.bf16 %v2204_v10, %v2203_v4  ;;  %v2542_v34 = vpack.c.bf16 %v2519_v2, %v2518_v36  ;;  %v2522_v4 = vld [vmem:[#allocation2 + $0x120] sm:$0xff]  ;;  %v2818_v2 = vld [vmem:[#allocation2 + $0xa9] sm:$0xff]  ;;  %v5353_v36 = vld [vmem:[#allocation8 + $0x228] sm:$0xff]  }
 0x208   : > { %v2544_v10 = vpack.c.bf16 %v2523_v16, %v2522_v4  ;;  %v2822_v16 = vld [vmem:[#allocation2 + $0xd9] sm:$0xff]  ;;  %v5355_v4 = vld [vmem:[#allocation8 + $0x238] sm:$0xff]  }
 0x20a   : > { %4587 = vmatpush3.bf16.msra.mxu0 %v5907_v5  ;;  %v1289_v5 = vld [vmem:[#allocation2 + $0x92] sm:$0xff] }
 0x20b   : > { %4588 = vmatprep.subr.bf16.mxu0 %v5911_v6  ;;  %v6116_v41 = vpack.c.bf16 %v1290_v35, %v1289_v5  ;;  %v2527_v5 = vld [vmem:[#allocation2 + $0x158] sm:$0xff] }
 0x20c   : > { %4557 = vmatmul.mubr.bf16.gmra.mrb[36].mxu0 %v6102_v17  ;;  %v2524_v35 = vld [vmem:[#allocation2 + $0x138] sm:$0xff] }
 0x20d   : > { %4697 = vmatmul.mubr.bf16.vlgmr.msra.gmra.mrb[16].mxu1 %v6096_v60  ;;  %4560 = vmatprep.mubr.bf16.mxu0 %v6105_v30 }
 0x20e   : > { %4729 = vmatpush3.bf16.msra.mxu1 %v5332_v59  ;;  %4700 = vmatprep.mubr.bf16.mxu1 %v6102_v17  ;;  %v6163_v59 = vpack.c.bf16 %v2224_v31, %v2223_v28  ;;  %v5350_v28 = vld [vmem:[#allocation8 + $0x210] sm:$0xff]  }
 0x20f   : > { %4730 = vmatprep.subr.bf16.mxu1 %v5333_v18  ;;  %4589 = vmatpush3.bf16.msra.mxu0 %v5911_v6  ;;  %v2207_v6 = vld [vmem:[#allocation2 + $0xaa] sm:$0xff]  ;;  %v2815_v31 = vld [vmem:[#allocation2 + $0x81] sm:$0xff] }
 0x210   : > { %4590 = vmatprep.subr.bf16.mxu0 %v5915_v7 }
 0x212   : > { %4731 = vmatpush3.bf16.msra.mxu1 %v5333_v18 }
 0x213   : > { %4732 = vmatprep.subr.bf16.mxu1 %v5334_v33  ;;  %4591 = vmatpush3.bf16.msra.mxu0 %v5915_v7  ;;  %v6126_v7 = vpack.c.bf16 %v2208_v47, %v2207_v6  ;;  %v2526_v6 = vld [vmem:[#allocation2 + $0x150] sm:$0xff] }
 0x214   : > { %4561 = vmatmul.mubr.bf16.gmra.mrb[40].mxu0 %v6114_v38  ;;  %4592 = vmatprep.subr.bf16.mxu0 %v5919_v8  ;;  %v2546_v47 = vpack.c.bf16 %v2527_v5, %v2526_v6  ;;  %v2829_v5 = vld [vmem:[#allocation2 + $0x129] sm:$0xff]  ;;  %v2828_v6 = vld [vmem:[#allocation2 + $0x121] sm:$0xff] }
 0x215   : > { %4701 = vmatmul.mubr.bf16.gmra.mrb[20].mxu1 %v6105_v30  ;;  %4564 = vmatprep.mubr.bf16.mxu0 %v6116_v41 }
 0x216   : > { %4704 = vmatprep.mubr.bf16.mxu1 %v6114_v38  ;;  %4733 = vmatpush3.bf16.msra.mxu1 %v5334_v33  ;;  %v2525_v33 = vld [vmem:[#allocation2 + $0x140] sm:$0xff] }
 0x217   : > { %4734 = vmatprep.subr.bf16.mxu1 %v5335_v46  ;;  %4593 = vmatpush3.bf16.msra.mxu0 %v5919_v8  ;;  %v2211_v8 = vld [vmem:[#allocation2 + $0xda] sm:$0xff] }
 0x218   : > { %4594 = vmatprep.subr.bf16.mxu0 %v5923_v9 }
 0x21a   : > { %4735 = vmatpush3.bf16.msra.mxu1 %v5335_v46  ;;  %v2545_v46 = vpack.c.bf16 %v2525_v33, %v2524_v35  ;;  %v2827_v33 = vld [vmem:[#allocation2 + $0x111] sm:$0xff]  ;;  %v2826_v35 = vld [vmem:[#allocation2 + $0x109] sm:$0xff] }
 0x21b   : > { %4736 = vmatprep.subr.bf16.mxu1 %v5336_v48  ;;  %4595 = vmatpush3.bf16.msra.mxu0 %v5923_v9  ;;  %v6138_v9 = vpack.c.bf16 %v2212_v29, %v2211_v8  ;;  %v2530_v8 = vld [vmem:[#allocation2 + $0x180] sm:$0xff] }
 0x21c   : > { %4565 = vmatmul.mubr.bf16.gmra.mrb[44].mxu0 %v6126_v7  ;;  %4596 = vmatprep.subr.bf16.mxu0 %v5927_v11  ;;  %v2548_v29 = vpack.c.bf16 %v2531_v49, %v2530_v8  ;;  %v2833_v49 = vld [vmem:[#allocation2 + $0x159] sm:$0xff] }
 0x21d   : > { %4705 = vmatmul.mubr.bf16.gmra.mrb[24].mxu1 %v6116_v41  ;;  %4568 = vmatprep.mubr.bf16.mxu0 %v6128_v52  ;;  %v5357_v8 = vld [vmem:[#allocation9 + $0x8] sm:$0xff]  }
 0x21e   : > { %4708 = vmatprep.mubr.bf16.mxu1 %v6126_v7  ;;  %4737 = vmatpush3.bf16.msra.mxu1 %v5336_v48  ;;  %v2529_v48 = vld [vmem:[#allocation2 + $0x170] sm:$0xff] }
 0x21f   : > { %4738 = vmatprep.subr.bf16.mxu1 %v5337_v53  ;;  %4597 = vmatpush3.bf16.msra.mxu0 %v5927_v11  ;;  %v2215_v11 = vld [vmem:[#allocation2 + $0x10a] sm:$0xff] }
 0x220   : > { %4598 = vmatprep.subr.bf16.mxu0 %v5931_v12  ;;  %v6147_v19 = vpack.c.bf16 %v2216_v1, %v2215_v11  ;;  %v2808_v11 = vld [vmem:[#allocation2 + $0x31] sm:$0xff] }
 0x222   : > { %4739 = vmatpush3.bf16.msra.mxu1 %v5337_v53  ;;  %v2547_v53 = vpack.c.bf16 %v2529_v48, %v2528_v50  ;;  %v2831_v48 = vld [vmem:[#allocation2 + $0x141] sm:$0xff]  ;;  %v2830_v50 = vld [vmem:[#allocation2 + $0x139] sm:$0xff] }
 0x223   : > { %4740 = vmatprep.subr.bf16.mxu1 %v5338_v37  ;;  %4599 = vmatpush3.bf16.msra.mxu0 %v5931_v12  ;;  %v2219_v12 = vld [vmem:[#allocation2 + $0x13a] sm:$0xff] }
 0x224   : > { %4569 = vmatmul.mubr.bf16.gmra.mrb[48].mxu0 %v6138_v9  ;;  %v6155_v43 = vpack.c.bf16 %v2220_v20, %v2219_v12  ;;  %v2812_v20 = vld [vmem:[#allocation2 + $0x61] sm:$0xff] }
 0x225   : > { %4709 = vmatmul.mubr.bf16.gmra.mrb[28].mxu1 %v6128_v52  ;;  %4572 = vmatprep.mubr.bf16.mxu0 %v6140_v57  ;;  %v2842_v25 = vpack.c.bf16 %v2813_v45, %v2812_v20  ;;  %v2838_v20 = vld [vmem:[#allocation2 + $0x199] sm:$0xff] }
 0x226   : > { %4712 = vmatprep.mubr.bf16.mxu1 %v6138_v9  ;;  %4741 = vmatpush3.bf16.msra.mxu1 %v5338_v37  ;;  %v2532_v37 = vld [vmem:[#allocation2 + $0x198] sm:$0xff] }
 0x227   : > { %4742 = vmatprep.subr.bf16.mxu1 %v5339_v58  ;;  %v2549_v56 = vpack.c.bf16 %v5364_v55, %v2532_v37  ;;  %v2832_v37 = vld [vmem:[#allocation2 + $0x151] sm:$0xff] }
 0x228   : > { %v2852_v55 = vpack.c.bf16 %v2833_v49, %v2832_v37 }
 0x22a   : > { %4743 = vmatpush3.bf16.msra.mxu1 %v5339_v58  ;;  %v2809_v58 = vld [vmem:[#allocation2 + $0x39] sm:$0xff] }
 0x22b   : > { %4776 = vmatprep.subr.bf16.mxu1 %v5340_v27  ;;  %v2840_v1 = vpack.c.bf16 %v2809_v58, %v2808_v11  ;;  %v2835_v58 = vld [vmem:[#allocation2 + $0x171] sm:$0xff]  ;;  %v2837_v11 = vld [vmem:[#allocation2 + $0x189] sm:$0xff] }
 0x22c   : > { %4573 = vmatmul.mubr.bf16.gmra.mrb[52].mxu0 %v6147_v19 }
 0x22d   : > { %4713 = vmatmul.mubr.bf16.gmra.mrb[0].mxu1 %v6140_v57  ;;  %4576 = vmatprep.mubr.bf16.mxu0 %v6149_v62 }
 0x22e   : > { %4716 = vmatprep.mubr.bf16.mxu1 %v6147_v19 }
 0x234   : > { %4577 = vmatmul.mubr.bf16.gmra.mrb[56].mxu0 %v6155_v43 }
 0x235   : > { %4717 = vmatmul.mubr.bf16.gmra.mrb[4].mxu1 %v6149_v62  ;;  %4580 = vmatprep.mubr.bf16.mxu0 %v6157_v61 }
 0x236   : > { %4720 = vmatprep.mubr.bf16.mxu1 %v6155_v43 }
 0x23c   : > { %4581 = vmatmul.mubr.bf16.gmra.mrb[60].mxu0 %v6163_v59 }
 0x23d   : > { %4721 = vmatmul.mubr.bf16.gmra.mrb[8].mxu1 %v6157_v61  ;;  %4600 = vmatprep.mubr.bf16.mxu0 %v6047_v32  ;;  %v5342_v32 = vld [vmem:[#allocation8 + $0x1d0] sm:$0xff]  }
 0x23e   : > { %4724 = vmatprep.mubr.bf16.mxu1 %v6163_v59 }
 0x244   : > { %4601 = vmatmul.mubr.bf16.vlgmr.msra.gmra.mrb[32].mxu0 %v6049_v13 }
 0x245   : > { %4725 = vmatmul.mubr.bf16.gmra.mrb[12].mxu1 %v6169_v42  ;;  %4604 = vmatprep.mubr.bf16.mxu0 %v6056_v51 }
 0x246   : > { %4744 = vmatprep.mubr.bf16.mxu1 %v6049_v13  ;;  %v5344_v13 = vld [vmem:[#allocation8 + $0x1e0] sm:$0xff]  }
 0x24c   : > { %4605 = vmatmul.mubr.bf16.gmra.mrb[36].mxu0 %v6058_v54 }
 0x24d   : > { %4745 = vmatmul.mubr.bf16.vlgmr.msra.gmra.mrb[16].mxu1 %v6056_v51  ;;  %4608 = vmatprep.mubr.bf16.mxu0 %v6064_v63  ;;  %v5345_v51 = vld [vmem:[#allocation8 + $0x1e8] sm:$0xff]  }
 0x24e   : > { %4777 = vmatpush3.bf16.msra.mxu1 %v5340_v27  ;;  %4748 = vmatprep.mubr.bf16.mxu1 %v6058_v54  ;;  %v5346_v54 = vld [vmem:[#allocation8 + $0x1f0] sm:$0xff]   ;;  %v2811_v27 = vld [vmem:[#allocation2 + $0x51] sm:$0xff] }
 0x24f   : > { %4778 = vmatprep.subr.bf16.mxu1 %v5341_v40  ;;  %v2841_v12 = vpack.c.bf16 %v2811_v27, %v2810_v14  ;;  %v5359_v27 = vld [vmem:[#allocation9 + $0x18] sm:$0xff]  }
 0x250   : > { %v2836_v14 = vld [vmem:[#allocation2 + $0x181] sm:$0xff] }
 0x252   : > { %4779 = vmatpush3.bf16.msra.mxu1 %v5341_v40  ;;  %v2843_v40 = vpack.c.bf16 %v2815_v31, %v2814_v24 }
 0x253   : > { %4780 = vmatprep.subr.bf16.mxu1 %v5342_v32 }
 0x254   : > { %4609 = vmatmul.mubr.bf16.gmra.mrb[40].mxu0 %v6066_v3 }
 0x255   : > { %4749 = vmatmul.mubr.bf16.gmra.mrb[20].mxu1 %v6064_v63  ;;  %4612 = vmatprep.mubr.bf16.mxu0 %v6072_v23  ;;  %v2517_v63 = vld [vmem:[#allocation2 + $0xe0] sm:$0xff] }
 0x256   : > { %4752 = vmatprep.mubr.bf16.mxu1 %v6066_v3  ;;  %4781 = vmatpush3.bf16.msra.mxu1 %v5342_v32  ;;  %v2541_v3 = vpack.c.bf16 %v2517_v63, %v2516_v15  ;;  %v2816_v32 = vld [vmem:[#allocation2 + $0x91] sm:$0xff]  ;;  %v2821_v63 = vld [vmem:[#allocation2 + $0xc9] sm:$0xff] }
 0x257   : > { %4782 = vmatprep.subr.bf16.mxu1 %v5343_v0 }
 0x25a   : > { %4783 = vmatpush3.bf16.msra.mxu1 %v5343_v0  ;;  %v5351_v0 = vld [vmem:[#allocation8 + $0x218] sm:$0xff]  }
 0x25b   : > { %4784 = vmatprep.subr.bf16.mxu1 %v5344_v13 }
 0x25c   : > { %4613 = vmatmul.mubr.bf16.gmra.mrb[44].mxu0 %v6074_v26 }
 0x25d   : > { %4753 = vmatmul.mubr.bf16.gmra.mrb[24].mxu1 %v6072_v23  ;;  %v2521_v23 = vld [vmem:[#allocation2 + $0x110] sm:$0xff] }
 0x25e   : > { %4756 = vmatprep.mubr.bf16.mxu1 %v6074_v26  ;;  %4785 = vmatpush3.bf16.msra.mxu1 %v5344_v13  ;;  %v2520_v26 = vld [vmem:[#allocation2 + $0x108] sm:$0xff]  ;;  %v2844_v13 = vpack.c.bf16 %v2817_v22, %v2816_v32 }
 0x25f   : > { %4786 = vmatprep.subr.bf16.mxu1 %v5345_v51  ;;  %v2543_v18 = vpack.c.bf16 %v2521_v23, %v2520_v26  ;;  %v2825_v23 = vld [vmem:[#allocation2 + $0xf9] sm:$0xff] }
 0x262   : > { %4787 = vmatpush3.bf16.msra.mxu1 %v5345_v51  ;;  %v5352_v51 = vld [vmem:[#allocation8 + $0x220] sm:$0xff]  }
 0x263   : > { %4788 = vmatprep.subr.bf16.mxu1 %v5346_v54 }
 0x265   : > { %4757 = vmatmul.mubr.bf16.gmra.mrb[28].mxu1 %v2541_v3  ;;  %v2820_v3 = vld [vmem:[#allocation2 + $0xc1] sm:$0xff] }
 0x266   : > { %4760 = vmatprep.mubr.bf16.mxu1 %v2542_v34  ;;  %4789 = vmatpush3.bf16.msra.mxu1 %v5346_v54  ;;  %v2819_v54 = vld [vmem:[#allocation2 + $0xb1] sm:$0xff]  ;;  %v5354_v34 = vld [vmem:[#allocation8 + $0x230] sm:$0xff]  }
 0x267   : > { %4790 = vmatprep.subr.bf16.mxu1 %v5347_v39  ;;  %v2845_v15 = vpack.c.bf16 %v2819_v54, %v2818_v2 }
 0x26a   : > { %4791 = vmatpush3.bf16.msra.mxu1 %v5347_v39  ;;  %v2846_v39 = vpack.c.bf16 %v2821_v63, %v2820_v3  ;;  %v5361_v3 = vld [vmem:[#allocation9 + $0x28] sm:$0xff]  }
 0x26b   : > { %4824 = vmatprep.subr.bf16.mxu1 %v5348_v44 }
 0x26d   : > { %4761 = vmatmul.mubr.bf16.gmra.mrb[0].mxu1 %v2543_v18  ;;  %v2824_v18 = vld [vmem:[#allocation2 + $0xf1] sm:$0xff] }
 0x26e   : > { %4764 = vmatprep.mubr.bf16.mxu1 %v2544_v10  ;;  %v2848_v10 = vpack.c.bf16 %v2825_v23, %v2824_v18 }
 0x275   : > { %4765 = vmatmul.mubr.bf16.gmra.mrb[4].mxu1 %v2545_v46  ;;  %v2849_v46 = vpack.c.bf16 %v2827_v33, %v2826_v35 }
 0x276   : > { %4768 = vmatprep.mubr.bf16.mxu1 %v2546_v47  ;;  %v2850_v47 = vpack.c.bf16 %v2829_v5, %v2828_v6  ;;  %v6244_v5 = vld [vmem:[%s6458_s4] ss:$0 sm:$0xff] }
 0x27d   : > { %4769 = vmatmul.mubr.bf16.gmra.mrb[8].mxu1 %v2547_v53  ;;  %v5356_v53 = vld [vmem:[#allocation9] sm:$0xff]  }
 0x27e   : > { %4772 = vmatprep.mubr.bf16.mxu1 %v2548_v29  ;;  %v2851_v29 = vpack.c.bf16 %v2831_v48, %v2830_v50  ;;  %4872 = vmatprep.subr.bf16.mxu0 %v5356_v53 }
 0x27f   : > { %4873 = vmatpush3.bf16.msra.mxu0 %v5356_v53 }
 0x280   : > { %4874 = vmatprep.subr.bf16.mxu0 %v5357_v8 }
 0x283   : > { %4875 = vmatpush3.bf16.msra.mxu0 %v5357_v8 }
 0x285   : > { %4773 = vmatmul.mubr.bf16.gmra.mrb[12].mxu1 %v2549_v56  ;;  %v5358_v56 = vld [vmem:[#allocation9 + $0x10] sm:$0xff]  }
 0x286   : > { %4792 = vmatprep.mubr.bf16.mxu1 %v2840_v1  ;;  %v2834_v1 = vld [vmem:[#allocation2 + $0x169] sm:$0xff]  ;;  %4876 = vmatprep.subr.bf16.mxu0 %v5358_v56 }
 0x287   : > { %v2853_v45 = vpack.c.bf16 %v2835_v58, %v2834_v1  ;;  %4877 = vmatpush3.bf16.msra.mxu0 %v5358_v56 }
 0x288   : > { %4878 = vmatprep.subr.bf16.mxu0 %v5359_v27 }
 0x28b   : > { %4879 = vmatpush3.bf16.msra.mxu0 %v5359_v27 }
 0x28d   : > { %4793 = vmatmul.mubr.bf16.vlgmr.msra.gmra.mrb[16].mxu1 %v2841_v12  ;;  %v2854_v12 = vpack.c.bf16 %v2837_v11, %v2836_v14 }
 0x28e   : > { %4825 = vmatpush3.bf16.msra.mxu1 %v5348_v44  ;;  %4796 = vmatprep.mubr.bf16.mxu1 %v2842_v25  ;;  %v2823_v44 = vld [vmem:[#allocation2 + $0xe1] sm:$0xff]  ;;  %v5360_v25 = vld [vmem:[#allocation9 + $0x20] sm:$0xff]  }
 0x28f   : > { %4826 = vmatprep.subr.bf16.mxu1 %v5349_v21  ;;  %v2847_v26 = vpack.c.bf16 %v2823_v44, %v2822_v16  ;;  %4880 = vmatprep.subr.bf16.mxu0 %v5360_v25  ;;  %v5363_v16 = vld [vmem:[#allocation9 + $0x38] sm:$0xff]  }
 0x290   : > { %4881 = vmatpush3.bf16.msra.mxu0 %v5360_v25 }
 0x291   : > { %4882 = vmatprep.subr.bf16.mxu0 %v5361_v3 }
 0x292   : > { %4827 = vmatpush3.bf16.msra.mxu1 %v5349_v21  ;;  %v2839_v21 = vld [vmem:[#allocation2 + $0x1a1] sm:$0xff] }
 0x293   : > { %4828 = vmatprep.subr.bf16.mxu1 %v5350_v28 }
 0x294   : > { %4883 = vmatpush3.bf16.msra.mxu0 %v5361_v3 }
 0x295   : > { %4797 = vmatmul.mubr.bf16.gmra.mrb[20].mxu1 %v2843_v40 }
 0x296   : > { %4800 = vmatprep.mubr.bf16.mxu1 %v2844_v13  ;;  %4829 = vmatpush3.bf16.msra.mxu1 %v5350_v28  ;;  %v2855_v28 = vpack.c.bf16 %v2839_v21, %v2838_v20 }
 0x297   : > { %4830 = vmatprep.subr.bf16.mxu1 %v5351_v0 }
 0x29a   : > { %4831 = vmatpush3.bf16.msra.mxu1 %v5351_v0 }
 0x29b   : > { %4832 = vmatprep.subr.bf16.mxu1 %v5352_v51 }
 0x29d   : > { %4801 = vmatmul.mubr.bf16.gmra.mrb[24].mxu1 %v2845_v15 }
 0x29e   : > { %4804 = vmatprep.mubr.bf16.mxu1 %v2846_v39  ;;  %4833 = vmatpush3.bf16.msra.mxu1 %v5352_v51 }
 0x29f   : > { %4834 = vmatprep.subr.bf16.mxu1 %v5353_v36 }
 0x2a2   : > { %4835 = vmatpush3.bf16.msra.mxu1 %v5353_v36 }
 0x2a3   : > { %4836 = vmatprep.subr.bf16.mxu1 %v5354_v34 }
 0x2a5   : > { %4805 = vmatmul.mubr.bf16.gmra.mrb[28].mxu1 %v2847_v26 }
 0x2a6   : > { %4808 = vmatprep.mubr.bf16.mxu1 %v2848_v10  ;;  %4837 = vmatpush3.bf16.msra.mxu1 %v5354_v34  ;;  %v5362_v34 = vld [vmem:[#allocation9 + $0x30] sm:$0xff]  }
 0x2a7   : > { %4838 = vmatprep.subr.bf16.mxu1 %v5355_v4  ;;  %4884 = vmatprep.subr.bf16.mxu0 %v5362_v34 }
 0x2a8   : > { %4885 = vmatpush3.bf16.msra.mxu0 %v5362_v34 }
 0x2a9   : > { %4886 = vmatprep.subr.bf16.mxu0 %v5363_v16 }
 0x2aa   : > { %4839 = vmatpush3.bf16.msra.mxu1 %v5355_v4 }
 0x2ac   : > { %4887 = vmatpush3.bf16.msra.mxu0 %v5363_v16 }
 0x2ad   : > { %4809 = vmatmul.mubr.bf16.gmra.mrb[0].mxu1 %v2849_v46 }
 0x2ae   : > { %4812 = vmatprep.mubr.bf16.mxu1 %v2850_v47 }
 0x2b5   : > { %4813 = vmatmul.mubr.bf16.gmra.mrb[4].mxu1 %v2851_v29 }
 0x2b6   : > { %4816 = vmatprep.mubr.bf16.mxu1 %v2852_v55 }
 0x2bd   : > { %4817 = vmatmul.mubr.bf16.gmra.mrb[8].mxu1 %v2853_v45 }
 0x2be   : > { %4820 = vmatprep.mubr.bf16.mxu1 %v2854_v12 }
 0x2c5   : > { %4821 = vmatmul.mubr.bf16.gmra.mrb[12].mxu1 %v2855_v28 }
 0x2c6   : > { %4840 = vmatprep.mubr.bf16.mxu1 %v6096_v60 }
 0x2cd   : > { %4841 = vmatmul.mubr.bf16.vlgmr.msra.gmra.mrb[16].mxu1 %v6102_v17 }
 0x2ce   : > { %4844 = vmatprep.mubr.bf16.mxu1 %v6105_v30 }
 0x2d5   : > { %4845 = vmatmul.mubr.bf16.gmra.mrb[20].mxu1 %v6114_v38 }
 0x2d6   : > { %4848 = vmatprep.mubr.bf16.mxu1 %v6116_v41  ;;  %v3144_v41 = vld [vmem:[#allocation2 + $0x19a] sm:$0xff] }
 0x2dd   : > { %4849 = vmatmul.mubr.bf16.gmra.mrb[24].mxu1 %v6126_v7  ;;  %v3145_v7 = vld [vmem:[#allocation2 + $0x1a2] sm:$0xff] }
 0x2de   : > { %4852 = vmatprep.mubr.bf16.mxu1 %v6128_v52 }
 0x2e5   : > { %4853 = vmatmul.mubr.bf16.gmra.mrb[28].mxu1 %v6138_v9 }
 0x2e6   : > { %4856 = vmatprep.mubr.bf16.mxu1 %v6140_v57  ;;  %v3161_v57 = vpack.c.bf16 %v3145_v7, %v3144_v41 }
 0x2ed   : > { %4857 = vmatmul.mubr.bf16.gmra.mrb[0].mxu1 %v6147_v19 }
 0x2ee   : > { %4860 = vmatprep.mubr.bf16.mxu1 %v6149_v62 }
 0x2f5   : > { %4861 = vmatmul.mubr.bf16.gmra.mrb[4].mxu1 %v6155_v43 }
 0x2f6   : > { %4864 = vmatprep.mubr.bf16.mxu1 %v6157_v61 }
 0x2f7   : > { %v6199_v60 = vpop.f32.mrb[48].mxu0 }
 0x2f8   : > { %v6201_v17 = vpop.f32.mrb[49].mxu0 }
 0x2f9   : > { %v6203_v30 = vpop.f32.mrb[50].mxu0 }
 0x2fa   : > { %v6205_v38 = vpop.f32.mrb[51].mxu0 }
 0x2fd   : > { %4865 = vmatmul.mubr.bf16.gmra.mrb[8].mxu1 %v6163_v59 }
 0x2fe   : > { %4868 = vmatprep.mubr.bf16.mxu1 %v6169_v42 }
 0x2ff   : > { %v6209_v52 = vpop.f32.mrb[52].mxu0 }
 0x300   : > { %v6211_v9 = vpop.f32.mrb[53].mxu0 }
 0x301   : > { %v6213_v19 = vpop.f32.mrb[54].mxu0 }
 0x302   : > { %v6215_v62 = vpop.f32.mrb[55].mxu0 }
 0x305   : > { %4869 = vmatmul.mubr.bf16.gmra.mrb[12].mxu1 %v3161_v57 }
 0x307   : > { %v6217_v43 = vpop.f32.mrb[56].mxu0 }
 0x308   : > { %v6219_v61 = vpop.f32.mrb[57].mxu0 }
 0x309   : > { %v6221_v31 = vpop.f32.mrb[58].mxu0 }
 0x30a   : > { %v6223_v59 = vpop.f32.mrb[59].mxu0 }
 0x30f   : > { %v6225_v42 = vpop.f32.mrb[60].mxu0 }
 0x310   : > { %v6227_v22 = vpop.f32.mrb[61].mxu0 }
 0x311   : > { %v6229_v24 = vpop.f32.mrb[62].mxu0 }
 0x312   : > { %v6231_v40 = vpop.f32.mrb[63].mxu0 }
 0x317   : > { %v4602_v32 = vpop.f32.mrb[32].mxu0 }
 0x318   : > { %v1730_v0 = vpop.f32.mrb[33].mxu0 }
 0x319   : > { %v4603_v13 = vpop.f32.mrb[34].mxu0 }
 0x31a   : > { %v1733_v51 = vpop.f32.mrb[35].mxu0 }
 0x31f   : > { %v4606_v54 = vpop.f32.mrb[36].mxu0 }
 0x320   : > { %v1746_v63 = vpop.f32.mrb[37].mxu0 }
 0x321   : > { %v4607_v2 = vpop.f32.mrb[38].mxu0 }
 0x322   : > { %v1749_v15 = vpop.f32.mrb[39].mxu0 }
 0x327   : > { %v4610_v36 = vpop.f32.mrb[40].mxu0 }
 0x328   : > { %v1762_v39 = vpop.f32.mrb[41].mxu0 }
 0x329   : > { %v4611_v44 = vpop.f32.mrb[42].mxu0 }
 0x32a   : > { %v1765_v23 = vpop.f32.mrb[43].mxu0 }
 0x32f   : > { %v6233_v26 = vpop.f32.mrb[44].mxu0 }
 0x330   : > { %v6235_v18 = vpop.f32.mrb[45].mxu0 }
 0x331   : > { %v6237_v4 = vpop.f32.mrb[46].mxu0 }
 0x332   : > { %v6239_v10 = vpop.f32.mrb[47].mxu0 }
 0x3a0   : > { %v4842_v33 = vpop.f32.mrb[16].mxu1 }
 0x3a1   : > { %v4936_v35 = vadd.f32 %v4842_v33, %v4602_v32  ;;  %v3261_v46 = vpop.f32.mrb[17].mxu1 }
 0x3a2   : > { %v4937_v6 = vadd.f32 %v3261_v46, %v1730_v0  ;;  %v4843_v47 = vpop.f32.mrb[18].mxu1 }
 0x3a3   : > { %v3429_v48 = vadd.f32 %v4936_v35, %v6244_v5  ;;  %v4938_v49 = vadd.f32 %v4843_v47, %v4603_v13  ;;  %v3264_v50 = vpop.f32.mrb[19].mxu1 }
 0x3a4   : > { %v3427_v53 = vadd.f32 %v4937_v6, %v6244_v5  ;;  %v4939_v8 = vadd.f32 %v3264_v50, %v1733_v51 }
 0x3a5   : > { %v3430_v29 = vadd.f32 %v4938_v49, %v6244_v5  ;;  %v3461_v55 = vmax.f32 %v3429_v48, 0.0 }
 0x3a6   : > { %v3428_v37 = vadd.f32 %v4939_v8, %v6244_v5  ;;  %v3459_v58 = vmax.f32 %v3427_v53, 0.0 }
 0x3a7   : > { %v3462_v56 = vmax.f32 %v3430_v29, 0.0 }
 0x3a8   : > { %v3460_v11 = vmax.f32 %v3428_v37, 0.0  ;;  %v4846_v1 = vpop.f32.mrb[20].mxu1 }
 0x3a9   : > { %v3492_v27 = vpack.c.bf16 %v3462_v56, %v3461_v55  ;;  %v4940_v45 = vadd.f32 %v4846_v1, %v4606_v54  ;;  %v3277_v14 = vpop.f32.mrb[21].mxu1 }
 0x3aa   : > { %v4941_v12 = vadd.f32 %v3277_v14, %v1746_v63  ;;  %v4847_v20 = vpop.f32.mrb[22].mxu1  ;;  %v3491_v21 = vpack.c.bf16 %v3460_v11, %v3459_v58 }
 0x3ab   : > { %v3433_v25 = vadd.f32 %v4940_v45, %v6244_v5  ;;  %v4942_v28 = vadd.f32 %v4847_v20, %v4607_v2  ;;  %v3280_v41 = vpop.f32.mrb[23].mxu1 }
 0x3ac   : > { %v3431_v7 = vadd.f32 %v4941_v12, %v6244_v5  ;;  %v4943_v57 = vadd.f32 %v3280_v41, %v1749_v15  ;;  %4888 = vmatprep.mubr.bf16.mxu0 %v3491_v21 }
 0x3ad   : > { %v3434_v32 = vadd.f32 %v4942_v28, %v6244_v5  ;;  %4889 = vmatmul.mubr.bf16.vlgmr.msra.gmra.mrb[64].mxu0 %v3492_v27  ;;  %v3465_v13 = vmax.f32 %v3433_v25, 0.0 }
 0x3ae   : > { %v3432_v0 = vadd.f32 %v4943_v57, %v6244_v5  ;;  %v3463_v54 = vmax.f32 %v3431_v7, 0.0 }
 0x3af   : > { %v3466_v51 = vmax.f32 %v3434_v32, 0.0 }
 0x3b0   : > { %v3464_v3 = vmax.f32 %v3432_v0, 0.0  ;;  %v4850_v63 = vpop.f32.mrb[24].mxu1 }
 0x3b1   : > { %v4944_v34 = vadd.f32 %v4850_v63, %v4610_v36  ;;  %v3293_v16 = vpop.f32.mrb[25].mxu1  ;;  %v3494_v33 = vpack.c.bf16 %v3466_v51, %v3465_v13 }
 0x3b2   : > { %v4945_v35 = vadd.f32 %v3293_v16, %v1762_v39  ;;  %v4851_v2 = vpop.f32.mrb[26].mxu1  ;;  %v3493_v46 = vpack.c.bf16 %v3464_v3, %v3463_v54 }
 0x3b3   : > { %v3437_v6 = vadd.f32 %v4944_v34, %v6244_v5  ;;  %v4946_v15 = vadd.f32 %v4851_v2, %v4611_v44  ;;  %v3296_v47 = vpop.f32.mrb[27].mxu1 }
 0x3b4   : > { %v3435_v48 = vadd.f32 %v4945_v35, %v6244_v5  ;;  %v4947_v49 = vadd.f32 %v3296_v47, %v1765_v23  ;;  %4892 = vmatprep.mubr.bf16.mxu0 %v3493_v46 }
 0x3b5   : > { %v3438_v50 = vadd.f32 %v4946_v15, %v6244_v5  ;;  %4893 = vmatmul.mubr.bf16.gmra.mrb[68].mxu0 %v3494_v33  ;;  %v3469_v8 = vmax.f32 %v3437_v6, 0.0 }
 0x3b6   : > { %v3436_v53 = vadd.f32 %v4947_v49, %v6244_v5  ;;  %v3467_v29 = vmax.f32 %v3435_v48, 0.0 }
 0x3b7   : > { %v3470_v36 = vmax.f32 %v3438_v50, 0.0 }
 0x3b8   : > { %v3468_v37 = vmax.f32 %v3436_v53, 0.0  ;;  %v4854_v39 = vpop.f32.mrb[28].mxu1 }
 0x3b9   : > { %v4948_v55 = vadd.f32 %v4854_v39, %v6233_v26  ;;  %v3309_v56 = vpop.f32.mrb[29].mxu1  ;;  %v3496_v58 = vpack.c.bf16 %v3470_v36, %v3469_v8 }
 0x3ba   : > { %v4949_v44 = vadd.f32 %v3309_v56, %v6235_v18  ;;  %v4855_v11 = vpop.f32.mrb[30].mxu1  ;;  %v3495_v1 = vpack.c.bf16 %v3468_v37, %v3467_v29 }
 0x3bb   : > { %v3441_v23 = vadd.f32 %v4948_v55, %v6244_v5  ;;  %v4950_v27 = vadd.f32 %v4855_v11, %v6237_v4  ;;  %v3312_v45 = vpop.f32.mrb[31].mxu1 }
 0x3bc   : > { %v3439_v14 = vadd.f32 %v4949_v44, %v6244_v5  ;;  %v4951_v12 = vadd.f32 %v3312_v45, %v6239_v10  ;;  %4896 = vmatprep.mubr.bf16.mxu0 %v3495_v1 }
 0x3bd   : > { %v3442_v20 = vadd.f32 %v4950_v27, %v6244_v5  ;;  %4897 = vmatmul.mubr.bf16.gmra.mrb[72].mxu0 %v3496_v58  ;;  %v3473_v21 = vmax.f32 %v3441_v23, 0.0 }
 0x3be   : > { %v3440_v26 = vadd.f32 %v4951_v12, %v6244_v5  ;;  %v3471_v18 = vmax.f32 %v3439_v14, 0.0 }
 0x3bf   : > { %v3474_v25 = vmax.f32 %v3442_v20, 0.0 }
 0x3c0   : > { %v3472_v28 = vmax.f32 %v3440_v26, 0.0  ;;  %v4858_v41 = vpop.f32.mrb[0].mxu1 }
 0x3c1   : > { %v4952_v7 = vadd.f32 %v4858_v41, %v6199_v60  ;;  %v3325_v57 = vpop.f32.mrb[1].mxu1  ;;  %v3498_v4 = vpack.c.bf16 %v3474_v25, %v3473_v21 }
 0x3c2   : > { %v4953_v32 = vadd.f32 %v3325_v57, %v6201_v17  ;;  %v4859_v0 = vpop.f32.mrb[2].mxu1  ;;  %v3497_v13 = vpack.c.bf16 %v3472_v28, %v3471_v18 }
 0x3c3   : > { %v3445_v10 = vadd.f32 %v4952_v7, %v6244_v5  ;;  %v4954_v51 = vadd.f32 %v4859_v0, %v6203_v30  ;;  %v3328_v54 = vpop.f32.mrb[3].mxu1 }
 0x3c4   : > { %v3443_v3 = vadd.f32 %v4953_v32, %v6244_v5  ;;  %v4955_v63 = vadd.f32 %v3328_v54, %v6205_v38  ;;  %4900 = vmatprep.mubr.bf16.mxu0 %v3497_v13 }
 0x3c5   : > { %v3446_v34 = vadd.f32 %v4954_v51, %v6244_v5  ;;  %4901 = vmatmul.mubr.bf16.gmra.mrb[76].mxu0 %v3498_v4  ;;  %v3477_v16 = vmax.f32 %v3445_v10, 0.0 }
 0x3c6   : > { %v3444_v60 = vadd.f32 %v4955_v63, %v6244_v5  ;;  %v3475_v17 = vmax.f32 %v3443_v3, 0.0 }
 0x3c7   : > { %v3478_v33 = vmax.f32 %v3446_v34, 0.0 }
 0x3c8   : > { %v3476_v35 = vmax.f32 %v3444_v60, 0.0  ;;  %v4862_v2 = vpop.f32.mrb[4].mxu1 }
 0x3c9   : > { %v4956_v46 = vadd.f32 %v4862_v2, %v6209_v52  ;;  %v3341_v6 = vpop.f32.mrb[5].mxu1  ;;  %v3500_v30 = vpack.c.bf16 %v3478_v33, %v3477_v16  ;;  %v3773_v16 = vld [vmem:[%s5815_s20 + $0x10] sm:$0xff]  ;;  %v3771_v2 = vld [vmem:[%s5815_s20] sm:$0xff] }
 0x3ca   : > { %v4957_v15 = vadd.f32 %v3341_v6, %v6211_v9  ;;  %v4863_v47 = vpop.f32.mrb[6].mxu1  ;;  %v3499_v48 = vpack.c.bf16 %v3476_v35, %v3475_v17 }
 0x3cb   : > { %v3449_v38 = vadd.f32 %v4956_v46, %v6244_v5  ;;  %v4958_v49 = vadd.f32 %v4863_v47, %v6213_v19  ;;  %v3344_v50 = vpop.f32.mrb[7].mxu1 }
 0x3cc   : > { %v3447_v53 = vadd.f32 %v4957_v15, %v6244_v5  ;;  %v4959_v8 = vadd.f32 %v3344_v50, %v6215_v62  ;;  %4904 = vmatprep.mubr.bf16.mxu0 %v3499_v48  ;;  %v3774_v15 = vld [vmem:[%s5815_s20 + $0x18] sm:$0xff] }
 0x3cd   : > { %v3450_v36 = vadd.f32 %v4958_v49, %v6244_v5  ;;  %4905 = vmatmul.mubr.bf16.gmra.mrb[80].mxu0 %v3500_v30  ;;  %v3481_v29 = vmax.f32 %v3449_v38, 0.0  ;;  %v3772_v49 = vld [vmem:[%s5815_s20 + $0x8] sm:$0xff] }
 0x3ce   : > { %v3448_v52 = vadd.f32 %v4959_v8, %v6244_v5  ;;  %v3479_v9 = vmax.f32 %v3447_v53, 0.0 }
 0x3cf   : > { %v3482_v37 = vmax.f32 %v3450_v36, 0.0 }
 0x3d0   : > { %v3480_v39 = vmax.f32 %v3448_v52, 0.0  ;;  %v4866_v55 = vpop.f32.mrb[8].mxu1 }
 0x3d1   : > { %v4960_v56 = vadd.f32 %v4866_v55, %v6217_v43  ;;  %v3357_v58 = vpop.f32.mrb[9].mxu1  ;;  %v3502_v19 = vpack.c.bf16 %v3482_v37, %v3481_v29 }
 0x3d2   : > { %v4961_v44 = vadd.f32 %v3357_v58, %v6219_v61  ;;  %v4867_v11 = vpop.f32.mrb[10].mxu1  ;;  %v3501_v1 = vpack.c.bf16 %v3480_v39, %v3479_v9  ;;  %v3777_v58 = vld [vmem:[%s5815_s20 + $0x30] sm:$0xff] }
 0x3d3   : > { %v3453_v62 = vadd.f32 %v4960_v56, %v6244_v5  ;;  %v4962_v23 = vadd.f32 %v4867_v11, %v6221_v31  ;;  %v3360_v27 = vpop.f32.mrb[11].mxu1 }
 0x3d4   : > { %v3451_v45 = vadd.f32 %v4961_v44, %v6244_v5  ;;  %v4963_v14 = vadd.f32 %v3360_v27, %v6223_v59  ;;  %4908 = vmatprep.mubr.bf16.mxu0 %v3501_v1  ;;  %v3775_v1 = vld [vmem:[%s5815_s20 + $0x20] sm:$0xff] }
 0x3d5   : > { %v3454_v12 = vadd.f32 %v4962_v23, %v6244_v5  ;;  %4909 = vmatmul.mubr.bf16.gmra.mrb[84].mxu0 %v3502_v19  ;;  %v3485_v20 = vmax.f32 %v3453_v62, 0.0 }
 0x3d6   : > { %v3452_v43 = vadd.f32 %v4963_v14, %v6244_v5  ;;  %v3483_v61 = vmax.f32 %v3451_v45, 0.0  ;;  %v3778_v45 = vld [vmem:[%s5815_s20 + $0x38] sm:$0xff] }
 0x3d7   : > { %v3486_v26 = vmax.f32 %v3454_v12, 0.0 }
 0x3d8   : > { %v3484_v21 = vmax.f32 %v3452_v43, 0.0  ;;  %v4870_v25 = vpop.f32.mrb[12].mxu1 }
 0x3d9   : > { %v4964_v18 = vadd.f32 %v4870_v25, %v6225_v42  ;;  %v3373_v28 = vpop.f32.mrb[13].mxu1  ;;  %v3504_v31 = vpack.c.bf16 %v3486_v26, %v3485_v20  ;;  %v3776_v20 = vld [vmem:[%s5815_s20 + $0x28] sm:$0xff] }
 0x3da   : > { %v4965_v41 = vadd.f32 %v3373_v28, %v6227_v22  ;;  %v4871_v7 = vpop.f32.mrb[14].mxu1  ;;  %v3503_v57 = vpack.c.bf16 %v3484_v21, %v3483_v61 }
 0x3db   : > { %v3457_v59 = vadd.f32 %v4964_v18, %v6244_v5  ;;  %v4966_v4 = vadd.f32 %v4871_v7, %v6229_v24  ;;  %v3376_v32 = vpop.f32.mrb[15].mxu1 }
 0x3dc   : > { %v3455_v0 = vadd.f32 %v4965_v41, %v6244_v5  ;;  %v4967_v13 = vadd.f32 %v3376_v32, %v6231_v40  ;;  %4912 = vmatprep.mubr.bf16.mxu0 %v3503_v57  ;;  %v6301_v40 = vld [vmem:[%s6460_s6] ss:$0 sm:$0xff] }
 0x3dd   : > { %v3458_v10 = vadd.f32 %v4966_v4, %v6244_v5  ;;  %4913 = vmatmul.mubr.bf16.gmra.mrb[88].mxu0 %v3504_v31  ;;  %v3489_v51 = vmax.f32 %v3457_v59, 0.0  ;;  %v3781_v4 = vld [vmem:[%s5815_s20 + $0x50] sm:$0xff] }
 0x3de   : > { %v3456_v42 = vadd.f32 %v4967_v13, %v6244_v5  ;;  %v3487_v54 = vmax.f32 %v3455_v0, 0.0 }
 0x3df   : > { %v3490_v22 = vmax.f32 %v3458_v10, 0.0  ;;  %v3779_v10 = vld [vmem:[%s5815_s20 + $0x40] sm:$0xff] }
 0x3e0   : > { %v3488_v3 = vmax.f32 %v3456_v42, 0.0 }
 0x3e1   : > { %v3506_v63 = vpack.c.bf16 %v3490_v22, %v3489_v51 }
 0x3e2   : > { %v3505_v24 = vpack.c.bf16 %v3488_v3, %v3487_v54  ;;  %v3782_v54 = vld [vmem:[%s5815_s20 + $0x58] sm:$0xff] }
 0x3e4   : > { %4916 = vmatprep.mubr.bf16.mxu0 %v3505_v24 }
 0x3e5   : > { %4917 = vmatmul.mubr.bf16.gmra.mrb[92].mxu0 %v3506_v63 }
 0x480   : > { %v4890_v34 = vpop.f32.mrb[64].mxu0 }
 0x481   : > { %v3621_v60 = vadd.f32 %v4890_v34, %v6301_v40  ;;  %v3612_v5 = vpop.f32.mrb[65].mxu0  ;;  %v3780_v34 = vld [vmem:[%s5815_s20 + $0x48] sm:$0xff] }
 0x482   : > { %v3613_v33 = vadd.f32 %v6301_v40, %v3612_v5  ;;  %v4891_v17 = vpop.f32.mrb[66].mxu0 }
 0x483   : > { %v3741_v35 = vmax.f32 %v3621_v60, 0.0  ;;  %v3624_v46 = vadd.f32 %v4891_v17, %v6301_v40  ;;  %v3615_v6 = vpop.f32.mrb[67].mxu0 }
 0x484   : > { %v3739_v30 = vmax.f32 %v3613_v33, 0.0  ;;  %v3616_v47 = vadd.f32 %v6301_v40, %v3615_v6 }
 0x485   : > { %v3805_v48 = vadd.f32 %v3773_v16, %v3741_v35  ;;  %v3742_v38 = vmax.f32 %v3624_v46, 0.0 }
 0x486   : > { %v3803_v50 = vadd.f32 %v3771_v2, %v3739_v30  ;;  %v3740_v53 = vmax.f32 %v3616_v47, 0.0  ;;  %v3785_v47 = vld [vmem:[%s5815_s20 + $0x70] sm:$0xff] }
 0x487   : > { %v3837_v8 = vmax.f32 %v3805_v48, 0.0  ;;  %v3806_v36 = vadd.f32 %v3774_v15, %v3742_v38 }
 0x488   : > { %v3835_v52 = vmax.f32 %v3803_v50, 0.0  ;;  %v3804_v29 = vadd.f32 %v3772_v49, %v3740_v53  ;;  %v4894_v37 = vpop.f32.mrb[68].mxu0  ;;  %v3783_v50 = vld [vmem:[%s5815_s20 + $0x60] sm:$0xff] }
 0x489   : > { %3869 = vst [vmem:[%s6313_s15 + $0x10] sm:$0xff] %v3837_v8  ;;  %v3838_v9 = vmax.f32 %v3806_v36, 0.0  ;;  %v3637_v39 = vadd.f32 %v4894_v37, %v6301_v40  ;;  %v3628_v55 = vpop.f32.mrb[69].mxu0 }
 0x48a   : > { %3867 = vst [vmem:[%s6313_s15] sm:$0xff] %v3835_v52  ;;  %v3836_v56 = vmax.f32 %v3804_v29, 0.0  ;;  %v3629_v19 = vadd.f32 %v6301_v40, %v3628_v55  ;;  %v4895_v44 = vpop.f32.mrb[70].mxu0  ;;  %v3786_v52 = vld [vmem:[%s5815_s20 + $0x78] sm:$0xff] }
 0x48b   : > { %3870 = vst [vmem:[%s6313_s15 + $0x18] sm:$0xff] %v3838_v9  ;;  %v3745_v11 = vmax.f32 %v3637_v39, 0.0  ;;  %v3640_v62 = vadd.f32 %v4895_v44, %v6301_v40  ;;  %v3631_v23 = vpop.f32.mrb[71].mxu0  ;;  %v3784_v39 = vld [vmem:[%s5815_s20 + $0x68] sm:$0xff] }
 0x48c   : > { %3868 = vst [vmem:[%s6313_s15 + $0x8] sm:$0xff] %v3836_v56  ;;  %v3743_v27 = vmax.f32 %v3629_v19, 0.0  ;;  %v3632_v14 = vadd.f32 %v6301_v40, %v3631_v23 }
 0x48d   : > { %v3809_v12 = vadd.f32 %v3777_v58, %v3745_v11  ;;  %v3746_v43 = vmax.f32 %v3640_v62, 0.0 }
 0x48e   : > { %v3807_v26 = vadd.f32 %v3775_v1, %v3743_v27  ;;  %v3744_v61 = vmax.f32 %v3632_v14, 0.0  ;;  %v3789_v14 = vld [vmem:[%s5815_s20 + $0x90] sm:$0xff] }
 0x48f   : > { %v3841_v21 = vmax.f32 %v3809_v12, 0.0  ;;  %v3810_v25 = vadd.f32 %v3778_v45, %v3746_v43 }
 0x490   : > { %v3839_v18 = vmax.f32 %v3807_v26, 0.0  ;;  %v3808_v28 = vadd.f32 %v3776_v20, %v3744_v61  ;;  %v4898_v31 = vpop.f32.mrb[72].mxu0  ;;  %v3787_v26 = vld [vmem:[%s5815_s20 + $0x80] sm:$0xff] }
 0x491   : > { %3873 = vst [vmem:[%s6313_s15 + $0x30] sm:$0xff] %v3841_v21  ;;  %v3842_v41 = vmax.f32 %v3810_v25, 0.0  ;;  %v3653_v7 = vadd.f32 %v4898_v31, %v6301_v40  ;;  %v3644_v57 = vpop.f32.mrb[73].mxu0 }
 0x492   : > { %3871 = vst [vmem:[%s6313_s15 + $0x20] sm:$0xff] %v3839_v18  ;;  %v3840_v59 = vmax.f32 %v3808_v28, 0.0  ;;  %v3645_v32 = vadd.f32 %v6301_v40, %v3644_v57  ;;  %v4899_v0 = vpop.f32.mrb[74].mxu0  ;;  %v3790_v18 = vld [vmem:[%s5815_s20 + $0x98] sm:$0xff] }
 0x493   : > { %3874 = vst [vmem:[%s6313_s15 + $0x38] sm:$0xff] %v3842_v41  ;;  %v3749_v13 = vmax.f32 %v3653_v7, 0.0  ;;  %v3656_v42 = vadd.f32 %v4899_v0, %v6301_v40  ;;  %v3647_v51 = vpop.f32.mrb[75].mxu0  ;;  %v3788_v7 = vld [vmem:[%s5815_s20 + $0x88] sm:$0xff] }
 0x494   : > { %3872 = vst [vmem:[%s6313_s15 + $0x28] sm:$0xff] %v3840_v59  ;;  %v3747_v22 = vmax.f32 %v3645_v32, 0.0  ;;  %v3648_v3 = vadd.f32 %v6301_v40, %v3647_v51 }
 0x495   : > { %v3813_v63 = vadd.f32 %v3781_v4, %v3749_v13  ;;  %v3750_v24 = vmax.f32 %v3656_v42, 0.0 }
 0x496   : > { %v3811_v60 = vadd.f32 %v3779_v10, %v3747_v22  ;;  %v3748_v5 = vmax.f32 %v3648_v3, 0.0  ;;  %v3793_v3 = vld [vmem:[%s5815_s20 + $0xb0] sm:$0xff] }
 0x497   : > { %v3845_v16 = vmax.f32 %v3813_v63, 0.0  ;;  %v3814_v33 = vadd.f32 %v3782_v54, %v3750_v24 }
 0x498   : > { %v3843_v17 = vmax.f32 %v3811_v60, 0.0  ;;  %v3812_v35 = vadd.f32 %v3780_v34, %v3748_v5  ;;  %v4902_v2 = vpop.f32.mrb[76].mxu0  ;;  %v3791_v60 = vld [vmem:[%s5815_s20 + $0xa0] sm:$0xff] }
 0x499   : > { %3877 = vst [vmem:[%s6313_s15 + $0x50] sm:$0xff] %v3845_v16  ;;  %v3846_v46 = vmax.f32 %v3814_v33, 0.0  ;;  %v3669_v6 = vadd.f32 %v4902_v2, %v6301_v40  ;;  %v3660_v30 = vpop.f32.mrb[77].mxu0 }
 0x49a   : > { %3875 = vst [vmem:[%s6313_s15 + $0x40] sm:$0xff] %v3843_v17  ;;  %v3844_v15 = vmax.f32 %v3812_v35, 0.0  ;;  %v3661_v48 = vadd.f32 %v6301_v40, %v3660_v30  ;;  %v4903_v38 = vpop.f32.mrb[78].mxu0  ;;  %v3794_v17 = vld [vmem:[%s5815_s20 + $0xb8] sm:$0xff] }
 0x49b   : > { %3878 = vst [vmem:[%s6313_s15 + $0x58] sm:$0xff] %v3846_v46  ;;  %v3753_v49 = vmax.f32 %v3669_v6, 0.0  ;;  %v3672_v53 = vadd.f32 %v4903_v38, %v6301_v40  ;;  %v3663_v8 = vpop.f32.mrb[79].mxu0  ;;  %v3792_v6 = vld [vmem:[%s5815_s20 + $0xa8] sm:$0xff] }
 0x49c   : > { %3876 = vst [vmem:[%s6313_s15 + $0x48] sm:$0xff] %v3844_v15  ;;  %v3751_v36 = vmax.f32 %v3661_v48, 0.0  ;;  %v3664_v29 = vadd.f32 %v6301_v40, %v3663_v8 }
 0x49d   : > { %v3817_v37 = vadd.f32 %v3785_v47, %v3753_v49  ;;  %v3754_v9 = vmax.f32 %v3672_v53, 0.0 }
 0x49e   : > { %v3815_v55 = vadd.f32 %v3783_v50, %v3751_v36  ;;  %v3752_v56 = vmax.f32 %v3664_v29, 0.0  ;;  %v3797_v29 = vld [vmem:[%s5815_s20 + $0xd0] sm:$0xff] }
 0x49f   : > { %v3849_v58 = vmax.f32 %v3817_v37, 0.0  ;;  %v3818_v19 = vadd.f32 %v3786_v52, %v3754_v9 }
 0x4a0   : > { %v3847_v44 = vmax.f32 %v3815_v55, 0.0  ;;  %v3816_v11 = vadd.f32 %v3784_v39, %v3752_v56  ;;  %v4906_v1 = vpop.f32.mrb[80].mxu0  ;;  %v3795_v55 = vld [vmem:[%s5815_s20 + $0xc0] sm:$0xff] }
 0x4a1   : > { %3881 = vst [vmem:[%s6313_s15 + $0x70] sm:$0xff] %v3849_v58  ;;  %v3850_v62 = vmax.f32 %v3818_v19, 0.0  ;;  %v3685_v23 = vadd.f32 %v4906_v1, %v6301_v40  ;;  %v3676_v27 = vpop.f32.mrb[81].mxu0 }
 0x4a2   : > { %3879 = vst [vmem:[%s6313_s15 + $0x60] sm:$0xff] %v3847_v44  ;;  %v3848_v45 = vmax.f32 %v3816_v11, 0.0  ;;  %v3677_v12 = vadd.f32 %v6301_v40, %v3676_v27  ;;  %v4907_v43 = vpop.f32.mrb[82].mxu0  ;;  %v3798_v44 = vld [vmem:[%s5815_s20 + $0xd8] sm:$0xff] }
 0x4a3   : > { %3882 = vst [vmem:[%s6313_s15 + $0x78] sm:$0xff] %v3850_v62  ;;  %v3757_v20 = vmax.f32 %v3685_v23, 0.0  ;;  %v3688_v61 = vadd.f32 %v4907_v43, %v6301_v40  ;;  %v3679_v21 = vpop.f32.mrb[83].mxu0  ;;  %v3796_v23 = vld [vmem:[%s5815_s20 + $0xc8] sm:$0xff] }
 0x4a4   : > { %3880 = vst [vmem:[%s6313_s15 + $0x68] sm:$0xff] %v3848_v45  ;;  %v3755_v25 = vmax.f32 %v3677_v12, 0.0  ;;  %v3680_v28 = vadd.f32 %v6301_v40, %v3679_v21 }
 0x4a5   : > { %v3821_v31 = vadd.f32 %v3789_v14, %v3757_v20  ;;  %v3758_v41 = vmax.f32 %v3688_v61, 0.0 }
 0x4a6   : > { %v3819_v57 = vadd.f32 %v3787_v26, %v3755_v25  ;;  %v3756_v59 = vmax.f32 %v3680_v28, 0.0  ;;  %v3801_v28 = vld [vmem:[%s5815_s20 + $0xf0] sm:$0xff] }
 0x4a7   : > { %v3853_v4 = vmax.f32 %v3821_v31, 0.0  ;;  %v3822_v32 = vadd.f32 %v3790_v18, %v3758_v41 }
 0x4a8   : > { %v3851_v0 = vmax.f32 %v3819_v57, 0.0  ;;  %v3820_v13 = vadd.f32 %v3788_v7, %v3756_v59  ;;  %v4910_v10 = vpop.f32.mrb[84].mxu0  ;;  %v3799_v57 = vld [vmem:[%s5815_s20 + $0xe0] sm:$0xff] }
 0x4a9   : > { %3885 = vst [vmem:[%s6313_s15 + $0x90] sm:$0xff] %v3853_v4  ;;  %v3854_v42 = vmax.f32 %v3822_v32, 0.0  ;;  %v3701_v51 = vadd.f32 %v4910_v10, %v6301_v40  ;;  %v3692_v22 = vpop.f32.mrb[85].mxu0 }
 0x4aa   : > { %3883 = vst [vmem:[%s6313_s15 + $0x80] sm:$0xff] %v3851_v0  ;;  %v3852_v54 = vmax.f32 %v3820_v13, 0.0  ;;  %v3693_v63 = vadd.f32 %v6301_v40, %v3692_v22  ;;  %v4911_v24 = vpop.f32.mrb[86].mxu0  ;;  %v3802_v0 = vld [vmem:[%s5815_s20 + $0xf8] sm:$0xff] }
 0x4ab   : > { %3886 = vst [vmem:[%s6313_s15 + $0x98] sm:$0xff] %v3854_v42  ;;  %v3761_v34 = vmax.f32 %v3701_v51, 0.0  ;;  %v3704_v5 = vadd.f32 %v4911_v24, %v6301_v40  ;;  %v3695_v16 = vpop.f32.mrb[87].mxu0  ;;  %v3800_v51 = vld [vmem:[%s5815_s20 + $0xe8] sm:$0xff]  ;;  %s5564_s20 = smov [#allocation11]  }
 0x4ac   : > { %3884 = vst [vmem:[%s6313_s15 + $0x88] sm:$0xff] %v3852_v54  ;;  %v3759_v33 = vmax.f32 %v3693_v63, 0.0  ;;  %v3696_v35 = vadd.f32 %v6301_v40, %v3695_v16  ;;  %s5483_s30 = sshll.u32 %s5564_s20, 4  ;;  %s5484_s30 = int_to_ptr.vmem [resolvable:$false] %s5483_s30 }
 0x4ad   : > { %v3825_v2 = vadd.f32 %v3793_v3, %v3761_v34  ;;  %v3762_v46 = vmax.f32 %v3704_v5, 0.0  ;;  %s5485_s9 = scalar_lea.vmem %s5484_s30, 8192  ;;  %p5486_p12 = scmp.lt.s32.totalorder %s6407_s12, %s5484_s30 }
 0x4ae   : > { %v3823_v30 = vadd.f32 %v3791_v60, %v3759_v33  ;;  %v3760_v15 = vmax.f32 %v3696_v35, 0.0  ;;  %p5487_p1 = scmp.lt.s32.totalorder %s5485_s9, %s5479_s13 }
 0x4af   : > { %v3857_v47 = vmax.f32 %v3825_v2, 0.0  ;;  %v3826_v48 = vadd.f32 %v3794_v17, %v3762_v46 }
 0x4b0   : > { %v3855_v38 = vmax.f32 %v3823_v30, 0.0  ;;  %v3824_v49 = vadd.f32 %v3792_v6, %v3760_v15  ;;  %v4914_v50 = vpop.f32.mrb[88].mxu0  ;;  %p5488_p2 = por %p5487_p1, %p5486_p12 }
 0x4b1   : > { %3889 = vst [vmem:[%s6313_s15 + $0xb0] sm:$0xff] %v3857_v47  ;;  %v3858_v53 = vmax.f32 %v3826_v48, 0.0  ;;  %v3717_v8 = vadd.f32 %v4914_v50, %v6301_v40  ;;  %v3708_v36 = vpop.f32.mrb[89].mxu0 }
 0x4b2   : > { %3887 = vst [vmem:[%s6313_s15 + $0xa0] sm:$0xff] %v3855_v38  ;;  %v3856_v52 = vmax.f32 %v3824_v49, 0.0  ;;  %v3709_v37 = vadd.f32 %v6301_v40, %v3708_v36  ;;  %v4915_v9 = vpop.f32.mrb[90].mxu0  ;;  %p5489_p4 = pnand %p5488_p2, %p5482_p7 }
 0x4b3   : > { %3890 = vst [vmem:[%s6313_s15 + $0xb8] sm:$0xff] %v3858_v53  ;;  %v3765_v39 = vmax.f32 %v3717_v8, 0.0  ;;  %v3720_v56 = vadd.f32 %v4915_v9, %v6301_v40  ;;  %v3711_v58 = vpop.f32.mrb[91].mxu0 }
 0x4b4   : > { %3888 = vst [vmem:[%s6313_s15 + $0xa8] sm:$0xff] %v3856_v52  ;;  %v3763_v19 = vmax.f32 %v3709_v37, 0.0  ;;  %v3712_v11 = vadd.f32 %v6301_v40, %v3711_v58 }
 0x4b5   : > { %v3829_v1 = vadd.f32 %v3797_v29, %v3765_v39  ;;  %v3766_v62 = vmax.f32 %v3720_v56, 0.0 }
 0x4b6   : > { %v3827_v27 = vadd.f32 %v3795_v55, %v3763_v19  ;;  %v3764_v45 = vmax.f32 %v3712_v11, 0.0 }
 0x4b7   : > { %v3861_v14 = vmax.f32 %v3829_v1, 0.0  ;;  %v3830_v12 = vadd.f32 %v3798_v44, %v3766_v62 }
 0x4b8   : > { %v3859_v43 = vmax.f32 %v3827_v27, 0.0  ;;  %v3828_v20 = vadd.f32 %v3796_v23, %v3764_v45  ;;  %v4918_v26 = vpop.f32.mrb[92].mxu0 }
 0x4b9   : > { %3893 = vst [vmem:[%s6313_s15 + $0xd0] sm:$0xff] %v3861_v14  ;;  %v3862_v61 = vmax.f32 %v3830_v12, 0.0  ;;  %v3733_v21 = vadd.f32 %v4918_v26, %v6301_v40  ;;  %v3724_v25 = vpop.f32.mrb[93].mxu0 }
 0x4ba   : > { %3891 = vst [vmem:[%s6313_s15 + $0xc0] sm:$0xff] %v3859_v43  ;;  %v3860_v18 = vmax.f32 %v3828_v20, 0.0  ;;  %v3725_v31 = vadd.f32 %v6301_v40, %v3724_v25  ;;  %v4919_v41 = vpop.f32.mrb[94].mxu0 }
 0x4bb   : > { %3894 = vst [vmem:[%s6313_s15 + $0xd8] sm:$0xff] %v3862_v61  ;;  %v3769_v7 = vmax.f32 %v3733_v21, 0.0  ;;  %v3736_v59 = vadd.f32 %v4919_v41, %v6301_v40  ;;  %v3727_v4 = vpop.f32.mrb[95].mxu0 }
 0x4bc   : > { %3892 = vst [vmem:[%s6313_s15 + $0xc8] sm:$0xff] %v3860_v18  ;;  %v3767_v32 = vmax.f32 %v3725_v31, 0.0  ;;  %v3728_v13 = vadd.f32 %v6301_v40, %v3727_v4 }
 0x4bd   : > { %v3833_v10 = vadd.f32 %v3801_v28, %v3769_v7  ;;  %v3770_v42 = vmax.f32 %v3736_v59, 0.0 }
 0x4be   : > { %v3831_v22 = vadd.f32 %v3799_v57, %v3767_v32  ;;  %v3768_v54 = vmax.f32 %v3728_v13, 0.0 }
 0x4bf   : > { %v3865_v3 = vmax.f32 %v3833_v10, 0.0  ;;  %v3834_v63 = vadd.f32 %v3802_v0, %v3770_v42 }
 0x4c0   : > { %v3863_v24 = vmax.f32 %v3831_v22, 0.0  ;;  %v3832_v34 = vadd.f32 %v3800_v51, %v3768_v54 }
 0x4c1   : > { %3897 = vst [vmem:[%s6313_s15 + $0xf0] sm:$0xff] %v3865_v3  ;;  %v3866_v60 = vmax.f32 %v3834_v63, 0.0 }
 0x4c2   : > { %3895 = vst [vmem:[%s6313_s15 + $0xe0] sm:$0xff] %v3863_v24  ;;  %v3864_v40 = vmax.f32 %v3832_v34, 0.0 }
 0x4c3   : > { %3898 = vst [vmem:[%s6313_s15 + $0xf8] sm:$0xff] %v3866_v60 }
 0x4c4   : > { %3896 = vst [vmem:[%s6313_s15 + $0xe8] sm:$0xff] %v3864_v40 }
 0x4c5   : > { %5492 = shalt.err (!%p5489_p4)
}
 0x4c6   : > { %s5493_s23 = scalar_lea.hbm %s6405_s16, 4096  ;;  %s5497_s14 = scalar_lea.hbm %s6461_s7, 8192 }
 0x4c7   : > { %p5494_p9 = scmp.ne.s32.totalorder %s6405_s16, %s5493_s23  ;;  %p5498_p8 = scmp.lt.u32.totalorder %s6405_s16, %s6461_s7 }
 0x4c8   : > { %p5499_p13 = scmp.lt.u32.totalorder %s5497_s14, %s5493_s23  ;;  %p5501_p10 = scmp.lt.u32.totalorder %s5493_s23, %s6405_s16 }
 0x4c9   : > { %p5495_p0 = pnand %p5494_p9, %p5761_p5 }
 0x4ca   : > { %p5500_p6 = por %p5499_p13, %p5498_p8 }
 0x4cb   : > { %p5496_p11 = pneg %p5495_p0 }
 0x4cc   : > { %p5502_p3 = por %p5501_p10, %p5500_p6 }
 0x4ce   : > { %p5503_p7 = pnand %p5502_p3, %p5496_p11 }
 0x4d0   : > { %5506 = shalt.err (!%p5503_p7)
}
 0x4d1   : > { %s5565_s8 = smov 128   ;;  %s5566_s17 = smov 8  }
 0x4d2   : > { %5206 = dma.vmem_to_hbm [thread:$0]  (%p5761_p5), %s6407_s12, 4096, %s6405_s16, %s3900_s28, %s5565_s8, %s5565_s8, %s5566_s17  }
 0x4d3 PF: > { %s6481_s13 = sld [smem:[#allocation16_spill]]  ;;  %s3928_s20 = sand.u32 1, %s5541_s24  }
 0x4d4   : > { %p6483_p1 = scmp.ge.s32.totalorder %s5553_s27, 2  ;;  %s3929_s30 = scalar_lea.sflag [#allocation5], %s3928_s20 }
 0x4d9   : > { %p6482_p12 = scmp.ne.s32.totalorder %s6481_s13, 0 }
 0x4db   : > { %p5223_p2 = pnand %p6483_p1, %p6482_p12 }
 0x4dd   : > { %5536 = dma.done.wait (!%p5223_p2), %s3929_s30, 4096  }
 0x4de   : > { %5538 = vsyncadd (!%p5223_p2), %s3929_s30, 4294963200  ;;  %p22_p4 = scmp.ge.s32.totalorder %s5747_s22, 4   ;;  %s6484_s24 = smov %s5545_s25 }
 0x4df   : > { %s6485_s25 = smov %s5549_s26  ;;  %s6486_s26 = smov %s5757_s18 }
 0x4e0   : > { %s6487_s27 = smov %s5747_s22  ;;  %24 = sbr.rel (!%p22_p4) target bundleno = 7 (0x7), region = 116 }
 0x4e7   :  { %3934 = vsyncpa [#allocation4], 1 }
 0x4e8   :  { %3936 = vsyncpa [#allocation4 + $0x1], 1 }
 0x4e9   :  { %3937 = vsyncpa [#allocation7], 1 }
 0x4ea   :  { %3938 = vsyncpa [#allocation10], 1 }
 0x4eb   :  { %3939 = vsyncpa [#allocation5], 1 }
 0x4ec   :  { %3941 = vsyncpa [#allocation5 + $0x1], 1 }

</bundles_post_ra>
